<compile_context>
chip_gen: v7x
topology: tpu7x:2x2x1
jax: 0.10.0
libtpu: 0.0.40
codegen_flags: <defaults>
</compile_context>

<pallas_src>
import math

import jax
import jax.numpy as jnp
from jax.experimental import pallas as pl
from jax.experimental.pallas import tpu as pltpu

# ---- problem sizes (small, consistent with the module) ----------------------
B, T, SK, SO = 2, 8, 8, 8      # batch, query seq, key seq, object seq
H = 32                         # hidden_size (== obj_hidden_size)
NH = 4                         # num_attention_heads
HD = H // NH                   # per-head size
SE_MID = H // 2                # SE bottleneck
EPS_BERT = 1e-12               # BertLayerNorm eps
EPS_SE = 1e-5                  # nn.LayerNorm default eps

# One static 0/1 head-block mask is shared by the K / V / softmax-denominator
# matmuls; that sharing requires HD == SK == SO (true here: all are 8).
assert HD == SK == SO and 2 * H == NH * (SK + SO)

# Row offsets inside the packed (ROWS, 2H) weight slab.
_R_WQ = 0                    # (H,  2H)  [wq | wq2] / sqrt(HD)
_R_WKT = _R_WQ + H           # (2H, 2H)  blockdiag(wk.T, wk2.T)
_R_WV = _R_WKT + 2 * H       # (2H, 2H)  blockdiag(wv, wv2)
_R_WO = _R_WV + 2 * H        # (2H, 2H)  blockdiag(wo, wo2)
_R_HM = _R_WO + 2 * H        # (2H, 2H)  static block-diag head mask (0/1)
_R_SW1 = _R_HM + 2 * H       # (2H, 2H)  SE first linear (cols >= SE_MID are 0)
_R_SW2 = _R_SW1 + 2 * H      # (SE_MID, 2H) SE second linear

# Row indices inside the packed (9, 2H) bias / LayerNorm vector slab.
_V_BQ, _V_BV, _V_BO, _V_LNG, _V_LNB, _V_SB1, _V_SLG, _V_SLB, _V_SB2 = range(9)


def _layernorm(h, g, b, eps):
    mu = jnp.mean(h, axis=-1, keepdims=True)
    var = jnp.mean((h - mu) ** 2, axis=-1, keepdims=True)
    return (h - mu) * jax.lax.rsqrt(var + eps) * g + b


# ---------------------------------------------------------------------------
# Pallas kernel: single grid step, everything lives in VMEM.
# ---------------------------------------------------------------------------
def _kernel(x_ref, kT_ref, v_ref, am_ref, w_ref, vec_ref, bkT_ref,
            out_ref, logit_ref):
    f32 = jnp.float32
    x = x_ref[...]                       # (B*T, H)
    am = am_ref[...]                     # (B*T, NH*(SK+SO)) additive, head-tiled
    vec = vec_ref[...]                   # (9, 2H) packed bias / LN rows

    w_q = w_ref[_R_WQ:_R_WQ + H, :]                    # (H, 2H), pre-scaled
    w_kT = w_ref[_R_WKT:_R_WKT + 2 * H, :]             # (2H, 2H)
    w_v = w_ref[_R_WV:_R_WV + 2 * H, :]                # (2H, 2H)
    w_o = w_ref[_R_WO:_R_WO + 2 * H, :]                # (2H, 2H)
    hmask = w_ref[_R_HM:_R_HM + 2 * H, :]              # (2H, 2H) 0/1 head blocks
    sw1 = w_ref[_R_SW1:_R_SW1 + 2 * H, :SE_MID]        # (2H, SE_MID)
    sw2 = w_ref[_R_SW2:_R_SW2 + SE_MID, :]             # (SE_MID, 2H)

    b_q = vec[_V_BQ:_V_BQ + 1, :]
    b_v = vec[_V_BV:_V_BV + 1, :]
    b_o = vec[_V_BO:_V_BO + 1, :]
    ln_g, ln_g2 = vec[_V_LNG:_V_LNG + 1, :H], vec[_V_LNG:_V_LNG + 1, H:]
    ln_b, ln_b2 = vec[_V_LNB:_V_LNB + 1, :H], vec[_V_LNB:_V_LNB + 1, H:]
    sb1 = vec[_V_SB1:_V_SB1 + 1, :SE_MID]
    slg = vec[_V_SLG:_V_SLG + 1, :SE_MID]
    slb = vec[_V_SLB:_V_SLB + 1, :SE_MID]
    sb2 = vec[_V_SB2:_V_SB2 + 1, :]

    # ---- fused projections over the flattened batch ----
    # q_all cols [0:H] = text query, [H:2H] = object query (both / sqrt(HD)).
    q_all = jnp.dot(x, w_q, preferred_element_type=f32) + b_q                  # (B*T, 2H)
    # kT_all rows [0:H] = text K^T, rows [H:2H] = object K^T (keys flattened over B).
    kT_all = jnp.dot(w_kT, kT_ref[...], preferred_element_type=f32) + bkT_ref[...]  # (2H, B*SK)
    # v_all cols [0:H] = text V, [H:2H] = object V.
    v_all = jnp.dot(v_ref[...], w_v, preferred_element_type=f32) + b_v         # (B*SK, 2H)

    # ---- both multi-head cross attentions, block-diagonal over (modality, head) ----
    logit_rows, ctx_rows = [], []
    for b in range(B):                   # tiny static batch loop (single grid step)
        qb = q_all[b * T:(b + 1) * T, :]                        # (T, 2H)
        ktb = kT_all[:, b * SK:(b + 1) * SK]                    # (2H, SK)
        vb = v_all[b * SK:(b + 1) * SK, :]                      # (SK, 2H)
        kbd = jnp.concatenate([ktb] * (2 * NH), axis=1) * hmask     # (2H, 2H)
        vbd = jnp.concatenate([vb] * (2 * NH), axis=0) * hmask      # (2H, 2H)
        # one MXU issue yields every (modality, head) score block, lane-dense
        logit = jnp.dot(qb, kbd, preferred_element_type=f32) + am[b * T:(b + 1) * T, :]
        logit_rows.append(logit)
        # row max over all blocks: per-head softmax is shift-invariant, so this
        # matches per-head max subtraction exactly (no fully-masked head blocks).
        m = jnp.max(logit, axis=-1, keepdims=True)
        e = jnp.exp(logit - m)
        num = jnp.dot(e, vbd, preferred_element_type=f32)       # unnormalized context
        den = jnp.dot(e, hmask, preferred_element_type=f32)     # per-block softmax sums
        ctx_rows.append(num / den)                              # (T, 2H) = [ctx | obj_ctx]
    logit_ref[...] = jnp.concatenate(logit_rows, axis=0)        # single lane-dense store
    ctx = jnp.concatenate(ctx_rows, axis=0)                     # (B*T, 2H)

    # ---- BertOutput for both modalities in one fused dense, residual + LN ----
    dense = jnp.dot(ctx, w_o, preferred_element_type=f32) + b_o                # (B*T, 2H)
    att = _layernorm(dense[:, :H] + x, ln_g, ln_b, EPS_BERT)
    oatt = _layernorm(dense[:, H:] + x, ln_g2, ln_b2, EPS_BERT)

    # ---- SE gating over the two modalities ----
    se_in = jnp.concatenate([att, oatt], axis=-1)                               # (B*T, 2H)
    h1 = jnp.dot(se_in, sw1, preferred_element_type=f32) + sb1
    h1 = jnp.maximum(_layernorm(h1, slg, slb, EPS_SE), 0.0)
    gates = jnp.dot(h1, sw2, preferred_element_type=f32) + sb2                  # (B*T, 2H)
    ga, gb = gates[:, :H], gates[:, H:]
    gm = jnp.maximum(ga, gb)
    ea, eb = jnp.exp(ga - gm), jnp.exp(gb - gm)
    out_ref[...] = (ea * att + eb * oatt) / (ea + eb)


# ---------------------------------------------------------------------------
# Wrapper: pack params / reshape inputs (free layout plumbing), one pallas_call.
# ---------------------------------------------------------------------------
def _pack_params(p):
    f32 = jnp.float32
    inv = 1.0 / math.sqrt(HD)

    def bdiag(a, c):
        return jnp.concatenate([
            jnp.concatenate([a, jnp.zeros((a.shape[0], c.shape[1]), f32)], axis=1),
            jnp.concatenate([jnp.zeros((c.shape[0], a.shape[1]), f32), c], axis=1),
        ], axis=0)

    def pad_row(r):
        return jnp.concatenate([r, jnp.zeros((1, 2 * H - r.shape[1]), f32)], axis=1)

    blk_i = jnp.arange(2 * H) // HD
    blk_j = jnp.arange(NH * (SK + SO)) // SK
    hmask = (blk_i[:, None] == blk_j[None, :]).astype(f32)        # (2H, 2H)

    w_all = jnp.concatenate([
        jnp.concatenate([p["wq"], p["wq2"]], axis=1) * inv,       # scale folded into Wq
        bdiag(p["wk"].T, p["wk2"].T),
        bdiag(p["wv"], p["wv2"]),
        bdiag(p["wo"], p["wo2"]),
        hmask,
        jnp.concatenate([p["sw1"], jnp.zeros((2 * H, 2 * H - SE_MID), f32)], axis=1),
        p["sw2"],
    ], axis=0)                                                    # (368, 2H)

    vec_all = jnp.concatenate([
        jnp.concatenate([p["bq"], p["bq2"]], axis=1) * inv,
        jnp.concatenate([p["bv"], p["bv2"]], axis=1),
        jnp.concatenate([p["bo"], p["bo2"]], axis=1),
        jnp.concatenate([p["lng"], p["lng2"]], axis=1),
        jnp.concatenate([p["lnb"], p["lnb2"]], axis=1),
        pad_row(p["sb1"]), pad_row(p["slg"]), pad_row(p["slb"]),
        p["sb2"],
    ], axis=0)                                                    # (9, 2H)

    b_kT = jnp.concatenate([p["bk"], p["bk2"]], axis=1).T         # (2H, 1) column bias
    return w_all, vec_all, b_kT


def multimodal_se_block2(x, key_, val, okey, oval, mask, omask, params):
    # wrapper-side layout plumbing: flatten batch, pre-transpose keys, head-tile masks
    x2 = x.reshape(B * T, H)
    kT_in = jnp.concatenate([key_.reshape(B * SK, H).T,
                             okey.reshape(B * SO, H).T], axis=0)          # (2H, B*SK)
    v_in = jnp.concatenate([val.reshape(B * SK, H),
                            oval.reshape(B * SO, H)], axis=1)             # (B*SK, 2H)
    am = jnp.concatenate([jnp.tile(mask, (1, 1, NH)),
                          jnp.tile(omask, (1, 1, NH))],
                         axis=-1).reshape(B * T, NH * (SK + SO))          # (B*T, 2H)
    w_all, vec_all, b_kT = _pack_params(params)

    operands = (x2, kT_in, v_in, am, w_all, vec_all, b_kT)
    out2, logit2 = pl.pallas_call(
        _kernel,
        grid=(1,),   # whole (tiny, overhead-bound) problem in one pipeline step
        in_specs=[pl.BlockSpec(a.shape, lambda i: (0, 0)) for a in operands],
        out_specs=(pl.BlockSpec((B * T, H), lambda i: (0, 0)),
                   pl.BlockSpec((B * T, NH * (SK + SO)), lambda i: (0, 0))),
        out_shape=(jax.ShapeDtypeStruct((B * T, H), jnp.float32),
                   jax.ShapeDtypeStruct((B * T, NH * (SK + SO)), jnp.float32)),
        compiler_params=pltpu.CompilerParams(dimension_semantics=("arbitrary",)),
    )(*operands)

    out = out2.reshape(B, T, H)
    logit = logit2[:, :NH * SK].reshape(B, T, NH, SK).transpose(0, 2, 1, 3)
    ologit = logit2[:, NH * SK:].reshape(B, T, NH, SO).transpose(0, 2, 1, 3)
    return out, logit, ologit


# ---------------------------------------------------------------------------
# Deterministic parameter init + pure-JAX reference for a self-check
# ---------------------------------------------------------------------------
def init_params(key):
    it = iter(jax.random.split(key, 64))

    def nk():
        return next(it)

    def rnd(shape, scale):
        return scale * jax.random.normal(nk(), shape, jnp.float32)

    p = {}
    for name, shape in [("wq", (H, H)), ("wk", (H, H)), ("wv", (H, H)),
                        ("wq2", (H, H)), ("wk2", (H, H)), ("wv2", (H, H)),
                        ("wo", (H, H)), ("wo2", (H, H)),
                        ("sw1", (2 * H, SE_MID)), ("sw2", (SE_MID, 2 * H))]:
        p[name] = rnd(shape, 0.05)
    for name, dim in [("bq", H), ("bk", H), ("bv", H), ("bq2", H), ("bk2", H),
                      ("bv2", H), ("bo", H), ("bo2", H),
                      ("sb1", SE_MID), ("sb2", 2 * H)]:
        p[name] = rnd((1, dim), 0.01)
    for name, dim in [("lng", H), ("lng2", H), ("slg", SE_MID)]:
        p[name] = 1.0 + rnd((1, dim), 0.05)
    for name, dim in [("lnb", H), ("lnb2", H), ("slb", SE_MID)]:
        p[name] = rnd((1, dim), 0.05)
    return p


def reference(x, key_, val, okey, oval, mask, omask, p):
    def proj(a, w, b):
        return a @ w + b[0]

    def attn(q_in, k_in, v_in, wq, bq, wk, bk, wv, bv, m):
        q = proj(q_in, p[wq], p[bq])
        k = proj(k_in, p[wk], p[bk])
        v = proj(v_in, p[wv], p[bv])
        Bq, Tq, _ = q.shape
        S = k.shape[1]
        qh = q.reshape(Bq, Tq, NH, HD).transpose(0, 2, 1, 3)
        kh = k.reshape(Bq, S, NH, HD).transpose(0, 2, 1, 3)
        vh = v.reshape(Bq, S, NH, HD).transpose(0, 2, 1, 3)
        scores = jnp.einsum("bhtd,bhsd->bhts", qh, kh) / math.sqrt(HD) + m[:, None]
        probs = jax.nn.softmax(scores, axis=-1)
        ctx = jnp.einsum("bhts,bhsd->bhtd", probs, vh)
        ctx = ctx.transpose(0, 2, 1, 3).reshape(Bq, Tq, -1)
        return ctx, scores

    mh, logit = attn(x, key_, val, "wq", "bq", "wk", "bk", "wv", "bv", mask)
    omh, ologit = attn(x, okey, oval, "wq2", "bq2", "wk2", "bk2", "wv2", "bv2", omask)
    att = _layernorm(proj(mh, p["wo"], p["bo"]) + x, p["lng"][0], p["lnb"][0], EPS_BERT)
    oatt = _layernorm(proj(omh, p["wo2"], p["bo2"]) + x, p["lng2"][0], p["lnb2"][0], EPS_BERT)
    hidden = jnp.stack([att, oatt], axis=-2)                 # (B, T, 2, H)
    flat = hidden.reshape(B, T, 2 * H)
    h1 = jax.nn.relu(_layernorm(proj(flat, p["sw1"], p["sb1"]),
                                p["slg"][0], p["slb"][0], EPS_SE))
    gate = proj(h1, p["sw2"], p["sb2"]).reshape(B, T, 2, H)
    gate = jax.nn.softmax(gate, axis=2)
    return (gate * hidden).sum(-2), logit, ologit


if __name__ == "__main__":
    key0 = jax.random.PRNGKey(0)
    kx, kk, kv, kok, kov, kp = jax.random.split(key0, 6)
    x = jax.random.normal(kx, (B, T, H), jnp.float32)
    key_ = jax.random.normal(kk, (B, SK, H), jnp.float32)
    val = jax.random.normal(kv, (B, SK, H), jnp.float32)
    okey = jax.random.normal(kok, (B, SO, H), jnp.float32)
    oval = jax.random.normal(kov, (B, SO, H), jnp.float32)
    # additive attention masks (0 = attend, -1e4 = masked out)
    mask = jnp.zeros((B, T, SK), jnp.float32).at[:, :, -2:].set(-1e4)
    omask = jnp.zeros((B, T, SO), jnp.float32).at[:, :, -1:].set(-1e4)
    params = init_params(kp)

    out, logit, ologit = jax.block_until_ready(
        multimodal_se_block2(x, key_, val, okey, oval, mask, omask, params))

    ref_out, ref_logit, ref_ologit = reference(x, key_, val, okey, oval, mask, omask, params)
    assert jnp.allclose(out, ref_out, atol=1e-4, rtol=1e-4)
    assert jnp.allclose(logit, ref_logit, atol=1e-4, rtol=1e-4)
    assert jnp.allclose(ologit, ref_ologit, atol=1e-4, rtol=1e-4)
    print("KERNEL_OK")
</pallas_src>

<mosaic_0001>
module attributes {stable_mosaic.version = 11 : i64} {
  func.func @_kernel(%arg0: i32, %arg1: memref<16x32xf32, #tpu.memory_space<vmem>>, %arg2: memref<64x16xf32, #tpu.memory_space<vmem>>, %arg3: memref<16x64xf32, #tpu.memory_space<vmem>>, %arg4: memref<16x64xf32, #tpu.memory_space<vmem>>, %arg5: memref<368x64xf32, #tpu.memory_space<vmem>>, %arg6: memref<9x64xf32, #tpu.memory_space<vmem>>, %arg7: memref<64x1xf32, #tpu.memory_space<vmem>>, %arg8: memref<16x32xf32, #tpu.memory_space<vmem>>, %arg9: memref<16x64xf32, #tpu.memory_space<vmem>>) attributes {dimension_semantics = [#tpu.dimension_semantics<arbitrary>], iteration_bounds = array<i64: 1>, scalar_prefetch = 0 : i64, scratch_operands = 0 : i64, tpu.core_type = #tpu.core_type<tc>, window_params = [{pipeline_mode = #tpu.pipeline_mode<synchronous>, transform_indices = @transform_0, window_bounds = array<i64: 16, 32>}, {pipeline_mode = #tpu.pipeline_mode<synchronous>, transform_indices = @transform_1, window_bounds = array<i64: 64, 16>}, {pipeline_mode = #tpu.pipeline_mode<synchronous>, transform_indices = @transform_2, window_bounds = array<i64: 16, 64>}, {pipeline_mode = #tpu.pipeline_mode<synchronous>, transform_indices = @transform_3, window_bounds = array<i64: 16, 64>}, {pipeline_mode = #tpu.pipeline_mode<synchronous>, transform_indices = @transform_4, window_bounds = array<i64: 368, 64>}, {pipeline_mode = #tpu.pipeline_mode<synchronous>, transform_indices = @transform_5, window_bounds = array<i64: 9, 64>}, {pipeline_mode = #tpu.pipeline_mode<synchronous>, transform_indices = @transform_6, window_bounds = array<i64: 64, 1>}, {pipeline_mode = #tpu.pipeline_mode<synchronous>, transform_indices = @transform_7, window_bounds = array<i64: 16, 32>}, {pipeline_mode = #tpu.pipeline_mode<synchronous>, transform_indices = @transform_8, window_bounds = array<i64: 16, 64>}]} {
    %c0 = arith.constant 0 : index
    %c0_0 = arith.constant 0 : index
    %0 = vector.load %arg1[%c0, %c0_0] : memref<16x32xf32, #tpu.memory_space<vmem>>, vector<16x32xf32>
    %c0_1 = arith.constant 0 : index
    %c0_2 = arith.constant 0 : index
    %1 = vector.load %arg4[%c0_1, %c0_2] : memref<16x64xf32, #tpu.memory_space<vmem>>, vector<16x64xf32>
    %c0_3 = arith.constant 0 : index
    %c0_4 = arith.constant 0 : index
    %2 = vector.load %arg6[%c0_3, %c0_4] : memref<9x64xf32, #tpu.memory_space<vmem>>, vector<9x64xf32>
    %c0_5 = arith.constant 0 : index
    %c0_6 = arith.constant 0 : index
    %3 = vector.load %arg5[%c0_5, %c0_6] : memref<368x64xf32, #tpu.memory_space<vmem>>, vector<32x64xf32>
    %c32 = arith.constant 32 : index
    %c0_7 = arith.constant 0 : index
    %4 = vector.load %arg5[%c32, %c0_7] : memref<368x64xf32, #tpu.memory_space<vmem>>, vector<64x64xf32>
    %c96 = arith.constant 96 : index
    %c0_8 = arith.constant 0 : index
    %5 = vector.load %arg5[%c96, %c0_8] : memref<368x64xf32, #tpu.memory_space<vmem>>, vector<64x64xf32>
    %c160 = arith.constant 160 : index
    %c0_9 = arith.constant 0 : index
    %6 = vector.load %arg5[%c160, %c0_9] : memref<368x64xf32, #tpu.memory_space<vmem>>, vector<64x64xf32>
    %c224 = arith.constant 224 : index
    %c0_10 = arith.constant 0 : index
    %7 = vector.load %arg5[%c224, %c0_10] : memref<368x64xf32, #tpu.memory_space<vmem>>, vector<64x64xf32>
    %c288 = arith.constant 288 : index
    %c0_11 = arith.constant 0 : index
    %8 = vector.load %arg5[%c288, %c0_11] : memref<368x64xf32, #tpu.memory_space<vmem>>, vector<64x16xf32>
    %c352 = arith.constant 352 : index
    %c0_12 = arith.constant 0 : index
    %9 = vector.load %arg5[%c352, %c0_12] : memref<368x64xf32, #tpu.memory_space<vmem>>, vector<16x64xf32>
    %10 = vector.extract_strided_slice %2 {offsets = [0, 0], sizes = [1, 64], strides = [1, 1]} : vector<9x64xf32> to vector<1x64xf32>
    %11 = vector.extract_strided_slice %2 {offsets = [1, 0], sizes = [1, 64], strides = [1, 1]} : vector<9x64xf32> to vector<1x64xf32>
    %12 = vector.extract_strided_slice %2 {offsets = [2, 0], sizes = [1, 64], strides = [1, 1]} : vector<9x64xf32> to vector<1x64xf32>
    %13 = vector.extract_strided_slice %2 {offsets = [3, 0], sizes = [1, 32], strides = [1, 1]} : vector<9x64xf32> to vector<1x32xf32>
    %14 = vector.extract_strided_slice %2 {offsets = [3, 32], sizes = [1, 32], strides = [1, 1]} : vector<9x64xf32> to vector<1x32xf32>
    %15 = vector.extract_strided_slice %2 {offsets = [4, 0], sizes = [1, 32], strides = [1, 1]} : vector<9x64xf32> to vector<1x32xf32>
    %16 = vector.extract_strided_slice %2 {offsets = [4, 32], sizes = [1, 32], strides = [1, 1]} : vector<9x64xf32> to vector<1x32xf32>
    %17 = vector.extract_strided_slice %2 {offsets = [5, 0], sizes = [1, 16], strides = [1, 1]} : vector<9x64xf32> to vector<1x16xf32>
    %18 = vector.extract_strided_slice %2 {offsets = [6, 0], sizes = [1, 16], strides = [1, 1]} : vector<9x64xf32> to vector<1x16xf32>
    %19 = vector.extract_strided_slice %2 {offsets = [7, 0], sizes = [1, 16], strides = [1, 1]} : vector<9x64xf32> to vector<1x16xf32>
    %20 = vector.extract_strided_slice %2 {offsets = [8, 0], sizes = [1, 64], strides = [1, 1]} : vector<9x64xf32> to vector<1x64xf32>
    %cst = arith.constant dense<0.000000e+00> : vector<16x64xf32>
    %21 = tpu.matmul %0, %3, %cst {dimension_numbers = #tpu.dot_dimension_numbers<[1], [0], [0], [1], [0, 0, 1, 1], [], []>} : vector<16x32xf32>, vector<32x64xf32>, vector<16x64xf32> -> vector<16x64xf32>
    %22 = vector.broadcast %10 : vector<1x64xf32> to vector<16x64xf32>
    %23 = arith.addf %21, %22 : vector<16x64xf32>
    %c0_13 = arith.constant 0 : index
    %c0_14 = arith.constant 0 : index
    %24 = vector.load %arg2[%c0_13, %c0_14] : memref<64x16xf32, #tpu.memory_space<vmem>>, vector<64x16xf32>
    %cst_15 = arith.constant dense<0.000000e+00> : vector<64x16xf32>
    %25 = tpu.matmul %4, %24, %cst_15 {dimension_numbers = #tpu.dot_dimension_numbers<[1], [0], [0], [1], [0, 0, 1, 1], [], []>} : vector<64x64xf32>, vector<64x16xf32>, vector<64x16xf32> -> vector<64x16xf32>
    %c0_16 = arith.constant 0 : index
    %c0_17 = arith.constant 0 : index
    %26 = vector.load %arg7[%c0_16, %c0_17] : memref<64x1xf32, #tpu.memory_space<vmem>>, vector<64x1xf32>
    %27 = vector.broadcast %26 : vector<64x1xf32> to vector<64x16xf32>
    %28 = arith.addf %25, %27 : vector<64x16xf32>
    %c0_18 = arith.constant 0 : index
    %c0_19 = arith.constant 0 : index
    %29 = vector.load %arg3[%c0_18, %c0_19] : memref<16x64xf32, #tpu.memory_space<vmem>>, vector<16x64xf32>
    %cst_20 = arith.constant dense<0.000000e+00> : vector<16x64xf32>
    %30 = tpu.matmul %29, %5, %cst_20 {dimension_numbers = #tpu.dot_dimension_numbers<[1], [0], [0], [1], [0, 0, 1, 1], [], []>} : vector<16x64xf32>, vector<64x64xf32>, vector<16x64xf32> -> vector<16x64xf32>
    %31 = vector.broadcast %11 : vector<1x64xf32> to vector<16x64xf32>
    %32 = arith.addf %30, %31 : vector<16x64xf32>
    %33 = vector.extract_strided_slice %23 {offsets = [0, 0], sizes = [8, 64], strides = [1, 1]} : vector<16x64xf32> to vector<8x64xf32>
    %34 = vector.extract_strided_slice %28 {offsets = [0, 0], sizes = [64, 8], strides = [1, 1]} : vector<64x16xf32> to vector<64x8xf32>
    %35 = vector.extract_strided_slice %32 {offsets = [0, 0], sizes = [8, 64], strides = [1, 1]} : vector<16x64xf32> to vector<8x64xf32>
    %36 = tpu.concatenate %34, %34, %34, %34, %34, %34, %34, %34 in 1 : vector<64x8xf32>, vector<64x8xf32>, vector<64x8xf32>, vector<64x8xf32>, vector<64x8xf32>, vector<64x8xf32>, vector<64x8xf32>, vector<64x8xf32> -> vector<64x64xf32>
    %37 = arith.mulf %36, %7 : vector<64x64xf32>
    %38 = tpu.concatenate %35, %35, %35, %35, %35, %35, %35, %35 in 0 : vector<8x64xf32>, vector<8x64xf32>, vector<8x64xf32>, vector<8x64xf32>, vector<8x64xf32>, vector<8x64xf32>, vector<8x64xf32>, vector<8x64xf32> -> vector<64x64xf32>
    %39 = arith.mulf %38, %7 : vector<64x64xf32>
    %cst_21 = arith.constant dense<0.000000e+00> : vector<8x64xf32>
    %40 = tpu.matmul %33, %37, %cst_21 {dimension_numbers = #tpu.dot_dimension_numbers<[1], [0], [0], [1], [0, 0, 1, 1], [], []>} : vector<8x64xf32>, vector<64x64xf32>, vector<8x64xf32> -> vector<8x64xf32>
    %41 = vector.extract_strided_slice %1 {offsets = [0, 0], sizes = [8, 64], strides = [1, 1]} : vector<16x64xf32> to vector<8x64xf32>
    %42 = arith.addf %40, %41 : vector<8x64xf32>
    %cst_22 = arith.constant dense<0xFF800000> : vector<8xf32>
    %43 = vector.multi_reduction <maximumf>, %42, %cst_22 [1] : vector<8x64xf32> to vector<8xf32>
    %44 = vector.shape_cast %43 : vector<8xf32> to vector<8x1xf32>
    %45 = vector.broadcast %44 : vector<8x1xf32> to vector<8x64xf32>
    %46 = arith.subf %42, %45 : vector<8x64xf32>
    %47 = math.exp %46 : vector<8x64xf32>
    %cst_23 = arith.constant dense<0.000000e+00> : vector<8x64xf32>
    %48 = tpu.matmul %47, %39, %cst_23 {dimension_numbers = #tpu.dot_dimension_numbers<[1], [0], [0], [1], [0, 0, 1, 1], [], []>} : vector<8x64xf32>, vector<64x64xf32>, vector<8x64xf32> -> vector<8x64xf32>
    %cst_24 = arith.constant dense<0.000000e+00> : vector<8x64xf32>
    %49 = tpu.matmul %47, %7, %cst_24 {dimension_numbers = #tpu.dot_dimension_numbers<[1], [0], [0], [1], [0, 0, 1, 1], [], []>} : vector<8x64xf32>, vector<64x64xf32>, vector<8x64xf32> -> vector<8x64xf32>
    %50 = arith.divf %48, %49 : vector<8x64xf32>
    %51 = vector.extract_strided_slice %23 {offsets = [8, 0], sizes = [8, 64], strides = [1, 1]} : vector<16x64xf32> to vector<8x64xf32>
    %52 = vector.extract_strided_slice %28 {offsets = [0, 8], sizes = [64, 8], strides = [1, 1]} : vector<64x16xf32> to vector<64x8xf32>
    %53 = vector.extract_strided_slice %32 {offsets = [8, 0], sizes = [8, 64], strides = [1, 1]} : vector<16x64xf32> to vector<8x64xf32>
    %54 = tpu.concatenate %52, %52, %52, %52, %52, %52, %52, %52 in 1 : vector<64x8xf32>, vector<64x8xf32>, vector<64x8xf32>, vector<64x8xf32>, vector<64x8xf32>, vector<64x8xf32>, vector<64x8xf32>, vector<64x8xf32> -> vector<64x64xf32>
    %55 = arith.mulf %54, %7 : vector<64x64xf32>
    %56 = tpu.concatenate %53, %53, %53, %53, %53, %53, %53, %53 in 0 : vector<8x64xf32>, vector<8x64xf32>, vector<8x64xf32>, vector<8x64xf32>, vector<8x64xf32>, vector<8x64xf32>, vector<8x64xf32>, vector<8x64xf32> -> vector<64x64xf32>
    %57 = arith.mulf %56, %7 : vector<64x64xf32>
    %cst_25 = arith.constant dense<0.000000e+00> : vector<8x64xf32>
    %58 = tpu.matmul %51, %55, %cst_25 {dimension_numbers = #tpu.dot_dimension_numbers<[1], [0], [0], [1], [0, 0, 1, 1], [], []>} : vector<8x64xf32>, vector<64x64xf32>, vector<8x64xf32> -> vector<8x64xf32>
    %59 = vector.extract_strided_slice %1 {offsets = [8, 0], sizes = [8, 64], strides = [1, 1]} : vector<16x64xf32> to vector<8x64xf32>
    %60 = arith.addf %58, %59 : vector<8x64xf32>
    %cst_26 = arith.constant dense<0xFF800000> : vector<8xf32>
    %61 = vector.multi_reduction <maximumf>, %60, %cst_26 [1] : vector<8x64xf32> to vector<8xf32>
    %62 = vector.shape_cast %61 : vector<8xf32> to vector<8x1xf32>
    %63 = vector.broadcast %62 : vector<8x1xf32> to vector<8x64xf32>
    %64 = arith.subf %60, %63 : vector<8x64xf32>
    %65 = math.exp %64 : vector<8x64xf32>
    %cst_27 = arith.constant dense<0.000000e+00> : vector<8x64xf32>
    %66 = tpu.matmul %65, %57, %cst_27 {dimension_numbers = #tpu.dot_dimension_numbers<[1], [0], [0], [1], [0, 0, 1, 1], [], []>} : vector<8x64xf32>, vector<64x64xf32>, vector<8x64xf32> -> vector<8x64xf32>
    %cst_28 = arith.constant dense<0.000000e+00> : vector<8x64xf32>
    %67 = tpu.matmul %65, %7, %cst_28 {dimension_numbers = #tpu.dot_dimension_numbers<[1], [0], [0], [1], [0, 0, 1, 1], [], []>} : vector<8x64xf32>, vector<64x64xf32>, vector<8x64xf32> -> vector<8x64xf32>
    %68 = arith.divf %66, %67 : vector<8x64xf32>
    %69 = tpu.concatenate %42, %60 in 0 : vector<8x64xf32>, vector<8x64xf32> -> vector<16x64xf32>
    %c0_29 = arith.constant 0 : index
    %c0_30 = arith.constant 0 : index
    %70 = vector.load %arg9[%c0_29, %c0_30] : memref<16x64xf32, #tpu.memory_space<vmem>>, vector<16x64xf32>
    tpu.vector_store %arg9[%c0_29, %c0_30], %69 {strides = array<i32>} : memref<16x64xf32, #tpu.memory_space<vmem>>, vector<16x64xf32>,
    %71 = tpu.concatenate %50, %68 in 0 : vector<8x64xf32>, vector<8x64xf32> -> vector<16x64xf32>
    %cst_31 = arith.constant dense<0.000000e+00> : vector<16x64xf32>
    %72 = tpu.matmul %71, %6, %cst_31 {dimension_numbers = #tpu.dot_dimension_numbers<[1], [0], [0], [1], [0, 0, 1, 1], [], []>} : vector<16x64xf32>, vector<64x64xf32>, vector<16x64xf32> -> vector<16x64xf32>
    %73 = vector.broadcast %12 : vector<1x64xf32> to vector<16x64xf32>
    %74 = arith.addf %72, %73 : vector<16x64xf32>
    %75 = vector.extract_strided_slice %74 {offsets = [0, 0], sizes = [16, 32], strides = [1, 1]} : vector<16x64xf32> to vector<16x32xf32>
    %76 = arith.addf %75, %0 : vector<16x32xf32>
    %cst_32 = arith.constant dense<0.000000e+00> : vector<16xf32>
    %77 = vector.multi_reduction <add>, %76, %cst_32 [1] : vector<16x32xf32> to vector<16xf32>
    %78 = vector.shape_cast %77 : vector<16xf32> to vector<16x1xf32>
    %cst_33 = arith.constant 3.200000e+01 : f32
    %79 = vector.broadcast %cst_33 : f32 to vector<16x1xf32>
    %80 = arith.divf %78, %79 : vector<16x1xf32>
    %81 = vector.broadcast %80 : vector<16x1xf32> to vector<16x32xf32>
    %82 = arith.subf %76, %81 : vector<16x32xf32>
    %83 = arith.mulf %82, %82 : vector<16x32xf32>
    %cst_34 = arith.constant dense<0.000000e+00> : vector<16xf32>
    %84 = vector.multi_reduction <add>, %83, %cst_34 [1] : vector<16x32xf32> to vector<16xf32>
    %85 = vector.shape_cast %84 : vector<16xf32> to vector<16x1xf32>
    %cst_35 = arith.constant 3.200000e+01 : f32
    %86 = vector.broadcast %cst_35 : f32 to vector<16x1xf32>
    %87 = arith.divf %85, %86 : vector<16x1xf32>
    %88 = vector.broadcast %80 : vector<16x1xf32> to vector<16x32xf32>
    %89 = arith.subf %76, %88 : vector<16x32xf32>
    %cst_36 = arith.constant 9.99999996E-13 : f32
    %90 = vector.broadcast %cst_36 : f32 to vector<16x1xf32>
    %91 = arith.addf %87, %90 : vector<16x1xf32>
    %92 = math.rsqrt %91 : vector<16x1xf32>
    %93 = vector.broadcast %92 : vector<16x1xf32> to vector<16x32xf32>
    %94 = arith.mulf %89, %93 : vector<16x32xf32>
    %95 = vector.broadcast %13 : vector<1x32xf32> to vector<16x32xf32>
    %96 = arith.mulf %94, %95 : vector<16x32xf32>
    %97 = vector.broadcast %15 : vector<1x32xf32> to vector<16x32xf32>
    %98 = arith.addf %96, %97 : vector<16x32xf32>
    %99 = vector.extract_strided_slice %74 {offsets = [0, 32], sizes = [16, 32], strides = [1, 1]} : vector<16x64xf32> to vector<16x32xf32>
    %100 = arith.addf %99, %0 : vector<16x32xf32>
    %cst_37 = arith.constant dense<0.000000e+00> : vector<16xf32>
    %101 = vector.multi_reduction <add>, %100, %cst_37 [1] : vector<16x32xf32> to vector<16xf32>
    %102 = vector.shape_cast %101 : vector<16xf32> to vector<16x1xf32>
    %cst_38 = arith.constant 3.200000e+01 : f32
    %103 = vector.broadcast %cst_38 : f32 to vector<16x1xf32>
    %104 = arith.divf %102, %103 : vector<16x1xf32>
    %105 = vector.broadcast %104 : vector<16x1xf32> to vector<16x32xf32>
    %106 = arith.subf %100, %105 : vector<16x32xf32>
    %107 = arith.mulf %106, %106 : vector<16x32xf32>
    %cst_39 = arith.constant dense<0.000000e+00> : vector<16xf32>
    %108 = vector.multi_reduction <add>, %107, %cst_39 [1] : vector<16x32xf32> to vector<16xf32>
    %109 = vector.shape_cast %108 : vector<16xf32> to vector<16x1xf32>
    %cst_40 = arith.constant 3.200000e+01 : f32
    %110 = vector.broadcast %cst_40 : f32 to vector<16x1xf32>
    %111 = arith.divf %109, %110 : vector<16x1xf32>
    %112 = vector.broadcast %104 : vector<16x1xf32> to vector<16x32xf32>
    %113 = arith.subf %100, %112 : vector<16x32xf32>
    %cst_41 = arith.constant 9.99999996E-13 : f32
    %114 = vector.broadcast %cst_41 : f32 to vector<16x1xf32>
    %115 = arith.addf %111, %114 : vector<16x1xf32>
    %116 = math.rsqrt %115 : vector<16x1xf32>
    %117 = vector.broadcast %116 : vector<16x1xf32> to vector<16x32xf32>
    %118 = arith.mulf %113, %117 : vector<16x32xf32>
    %119 = vector.broadcast %14 : vector<1x32xf32> to vector<16x32xf32>
    %120 = arith.mulf %118, %119 : vector<16x32xf32>
    %121 = vector.broadcast %16 : vector<1x32xf32> to vector<16x32xf32>
    %122 = arith.addf %120, %121 : vector<16x32xf32>
    %123 = tpu.concatenate %98, %122 in 1 : vector<16x32xf32>, vector<16x32xf32> -> vector<16x64xf32>
    %cst_42 = arith.constant dense<0.000000e+00> : vector<16x16xf32>
    %124 = tpu.matmul %123, %8, %cst_42 {dimension_numbers = #tpu.dot_dimension_numbers<[1], [0], [0], [1], [0, 0, 1, 1], [], []>} : vector<16x64xf32>, vector<64x16xf32>, vector<16x16xf32> -> vector<16x16xf32>
    %125 = vector.broadcast %17 : vector<1x16xf32> to vector<16x16xf32>
    %126 = arith.addf %124, %125 : vector<16x16xf32>
    %cst_43 = arith.constant dense<0.000000e+00> : vector<16xf32>
    %127 = vector.multi_reduction <add>, %126, %cst_43 [1] : vector<16x16xf32> to vector<16xf32>
    %128 = vector.shape_cast %127 : vector<16xf32> to vector<16x1xf32>
    %cst_44 = arith.constant 1.600000e+01 : f32
    %129 = vector.broadcast %cst_44 : f32 to vector<16x1xf32>
    %130 = arith.divf %128, %129 : vector<16x1xf32>
    %131 = vector.broadcast %130 : vector<16x1xf32> to vector<16x16xf32>
    %132 = arith.subf %126, %131 : vector<16x16xf32>
    %133 = arith.mulf %132, %132 : vector<16x16xf32>
    %cst_45 = arith.constant dense<0.000000e+00> : vector<16xf32>
    %134 = vector.multi_reduction <add>, %133, %cst_45 [1] : vector<16x16xf32> to vector<16xf32>
    %135 = vector.shape_cast %134 : vector<16xf32> to vector<16x1xf32>
    %cst_46 = arith.constant 1.600000e+01 : f32
    %136 = vector.broadcast %cst_46 : f32 to vector<16x1xf32>
    %137 = arith.divf %135, %136 : vector<16x1xf32>
    %138 = vector.broadcast %130 : vector<16x1xf32> to vector<16x16xf32>
    %139 = arith.subf %126, %138 : vector<16x16xf32>
    %cst_47 = arith.constant 9.99999974E-6 : f32
    %140 = vector.broadcast %cst_47 : f32 to vector<16x1xf32>
    %141 = arith.addf %137, %140 : vector<16x1xf32>
    %142 = math.rsqrt %141 : vector<16x1xf32>
    %143 = vector.broadcast %142 : vector<16x1xf32> to vector<16x16xf32>
    %144 = arith.mulf %139, %143 : vector<16x16xf32>
    %145 = vector.broadcast %18 : vector<1x16xf32> to vector<16x16xf32>
    %146 = arith.mulf %144, %145 : vector<16x16xf32>
    %147 = vector.broadcast %19 : vector<1x16xf32> to vector<16x16xf32>
    %148 = arith.addf %146, %147 : vector<16x16xf32>
    %cst_48 = arith.constant 0.000000e+00 : f32
    %149 = vector.broadcast %cst_48 : f32 to vector<16x16xf32>
    %150 = arith.maximumf %148, %149 : vector<16x16xf32>
    %cst_49 = arith.constant dense<0.000000e+00> : vector<16x64xf32>
    %151 = tpu.matmul %150, %9, %cst_49 {dimension_numbers = #tpu.dot_dimension_numbers<[1], [0], [0], [1], [0, 0, 1, 1], [], []>} : vector<16x16xf32>, vector<16x64xf32>, vector<16x64xf32> -> vector<16x64xf32>
    %152 = vector.broadcast %20 : vector<1x64xf32> to vector<16x64xf32>
    %153 = arith.addf %151, %152 : vector<16x64xf32>
    %154 = vector.extract_strided_slice %153 {offsets = [0, 0], sizes = [16, 32], strides = [1, 1]} : vector<16x64xf32> to vector<16x32xf32>
    %155 = vector.extract_strided_slice %153 {offsets = [0, 32], sizes = [16, 32], strides = [1, 1]} : vector<16x64xf32> to vector<16x32xf32>
    %156 = arith.maximumf %154, %155 : vector<16x32xf32>
    %157 = arith.subf %154, %156 : vector<16x32xf32>
    %158 = math.exp %157 : vector<16x32xf32>
    %159 = arith.subf %155, %156 : vector<16x32xf32>
    %160 = math.exp %159 : vector<16x32xf32>
    %161 = arith.mulf %158, %98 : vector<16x32xf32>
    %162 = arith.mulf %160, %122 : vector<16x32xf32>
    %163 = arith.addf %161, %162 : vector<16x32xf32>
    %164 = arith.addf %158, %160 : vector<16x32xf32>
    %165 = arith.divf %163, %164 : vector<16x32xf32>
    %c0_50 = arith.constant 0 : index
    %c0_51 = arith.constant 0 : index
    %166 = vector.load %arg8[%c0_50, %c0_51] : memref<16x32xf32, #tpu.memory_space<vmem>>, vector<16x32xf32>
    tpu.vector_store %arg8[%c0_50, %c0_51], %165 {strides = array<i32>} : memref<16x32xf32, #tpu.memory_space<vmem>>, vector<16x32xf32>,
    return
  }
  func.func @transform_0(%arg0: i32) -> (i32, i32) {
    %c0_i32 = arith.constant 0 : i32
    %c0_i32_0 = arith.constant 0 : i32
    %c0_i32_1 = arith.constant 0 : i32
    return %c0_i32, %c0_i32_0 : i32, i32
  }
  func.func @transform_1(%arg0: i32) -> (i32, i32) {
    %c0_i32 = arith.constant 0 : i32
    %c0_i32_0 = arith.constant 0 : i32
    %c0_i32_1 = arith.constant 0 : i32
    return %c0_i32, %c0_i32_0 : i32, i32
  }
  func.func @transform_2(%arg0: i32) -> (i32, i32) {
    %c0_i32 = arith.constant 0 : i32
    %c0_i32_0 = arith.constant 0 : i32
    %c0_i32_1 = arith.constant 0 : i32
    return %c0_i32, %c0_i32_0 : i32, i32
  }
  func.func @transform_3(%arg0: i32) -> (i32, i32) {
    %c0_i32 = arith.constant 0 : i32
    %c0_i32_0 = arith.constant 0 : i32
    %c0_i32_1 = arith.constant 0 : i32
    return %c0_i32, %c0_i32_0 : i32, i32
  }
  func.func @transform_4(%arg0: i32) -> (i32, i32) {
    %c0_i32 = arith.constant 0 : i32
    %c0_i32_0 = arith.constant 0 : i32
    %c0_i32_1 = arith.constant 0 : i32
    return %c0_i32, %c0_i32_0 : i32, i32
  }
  func.func @transform_5(%arg0: i32) -> (i32, i32) {
    %c0_i32 = arith.constant 0 : i32
    %c0_i32_0 = arith.constant 0 : i32
    %c0_i32_1 = arith.constant 0 : i32
    return %c0_i32, %c0_i32_0 : i32, i32
  }
  func.func @transform_6(%arg0: i32) -> (i32, i32) {
    %c0_i32 = arith.constant 0 : i32
    %c0_i32_0 = arith.constant 0 : i32
    %c0_i32_1 = arith.constant 0 : i32
    return %c0_i32, %c0_i32_0 : i32, i32
  }
  func.func @transform_7(%arg0: i32) -> (i32, i32) {
    %c0_i32 = arith.constant 0 : i32
    %c0_i32_0 = arith.constant 0 : i32
    %c0_i32_1 = arith.constant 0 : i32
    return %c0_i32, %c0_i32_0 : i32, i32
  }
  func.func @transform_8(%arg0: i32) -> (i32, i32) {
    %c0_i32 = arith.constant 0 : i32
    %c0_i32_0 = arith.constant 0 : i32
    %c0_i32_1 = arith.constant 0 : i32
    return %c0_i32, %c0_i32_0 : i32, i32
  }
}

</mosaic_0001>

<bundles_post_ra>
// kernel: tpu_custom_call.1
= control target key start
LH: loop header
LB: loop body
LE: loop exit
PB: predicated region body
PF: predicated region fallthrough
CT: control target
= control target key end

     0   :  { %14 = vsyncpa [#allocation3], 0  ;;  %vm224_vm0 = vcmask 523264   ;;  %v2327_v5 = vmov 0   ;;  %s3343_s0 = inlined_call_operand.vmem [shape: f32[16,32], index: 0, kind: input, shape index: {}]   ;;  %s3344_s1 = inlined_call_operand.vmem [shape: f32[64,16], index: 1, kind: input, shape index: {}]   ;;  %s3345_s2 = inlined_call_operand.vmem [shape: f32[16,64], index: 2, kind: input, shape index: {}]   ;;  %s3346_s3 = inlined_call_operand.vmem [shape: f32[16,64], index: 3, kind: input, shape index: {}]   ;;  %s3347_s4 = inlined_call_operand.vmem [shape: f32[368,64], index: 4, kind: input, shape index: {}]   ;;  %s3348_s5 = inlined_call_operand.vmem [shape: f32[9,64], index: 5, kind: input, shape index: {}]   ;;  %s3349_s6 = inlined_call_operand.vmem [shape: f32[64,1], index: 6, kind: input, shape index: {}]   ;;  %s3350_s7 = inlined_call_operand.hbm [shape: f32[16,32], index: 7, kind: output, shape index: {0}]   ;;  %s3351_s8 = inlined_call_operand.hbm [shape: f32[16,64], index: 8, kind: output, shape index: {1}]  }
   0x1   :  { %v168_v0 = vld [vmem:[%s3344_s1] sm:$0xff]  ;;  %v169_v1 = vld [vmem:[%s3344_s1 + $0x8] sm:$0xff]  ;;  %v170_v2 = vld [vmem:[%s3344_s1 + $0x10] sm:$0xff]  ;;  %2242 = vset.pattern.permute.xlu0 %v2327_v5  ;;  %2243 = vset.pattern.permute.xlu1 %v2327_v5 }
   0x2   :  { %v2086_v3 = vpack.c.bf16 %v169_v1, %v168_v0  ;;  %v171_v4 = vld [vmem:[%s3344_s1 + $0x18] sm:$0xff]  ;;  %v172_v7 = vld [vmem:[%s3344_s1 + $0x20] sm:$0xff]  ;;  %v173_v8 = vld [vmem:[%s3344_s1 + $0x28] sm:$0xff] }
   0x3   :  { %v2090_v6 = vpack.c.bf16 %v171_v4, %v170_v2  ;;  %v40_v9 = vld [vmem:[%s3347_s4 + $0x20] sm:$0xff]  ;;  %v2094_v10 = vpack.c.bf16 %v173_v8, %v172_v7  ;;  %v174_v12 = vld [vmem:[%s3344_s1 + $0x30] sm:$0xff]  ;;  %v175_v13 = vld [vmem:[%s3344_s1 + $0x38] sm:$0xff] }
   0x4   :  { %2087 = vmatprep.subr.bf16.mxu1 %v2086_v3  ;;  %1888 = vmatprep.mubr.msk.f32.mxu1 %vm224_vm0, %v40_v9  ;;  %v176_v11 = vld [vmem:[%s3349_s6] sm:$0xff]  ;;  %v178_v14 = vld [vmem:[%s3349_s6 + $0x10] sm:$0xff]  ;;  %v177_v15 = vld [vmem:[%s3349_s6 + $0x8] sm:$0xff] }
   0x5   :  { %2089 = vmatpush3.bf16.msra.mxu1 %v2086_v3  ;;  %186 = vperm.xlu0 %2242, %v176_v11   ;;  %v179_v16 = vld [vmem:[%s3349_s6 + $0x18] sm:$0xff] }
   0x6   :  { %2091 = vmatprep.subr.bf16.mxu1 %v2090_v6  ;;  %196 = vperm.xlu1 %2243, %v178_v14  }
   0x9   :  { %2093 = vmatpush3.bf16.msra.mxu1 %v2090_v6 }
   0xa   :  { %15 = vsyncpa [#allocation5], 0  ;;  %2095 = vmatprep.subr.bf16.mxu1 %v2094_v10  ;;  %v2098_v17 = vpack.c.bf16 %v175_v13, %v174_v12  ;;  %191 = vperm.xlu0 %2242, %v177_v15   ;;  %v180_v18 = vld [vmem:[%s3349_s6 + $0x20] sm:$0xff]  ;;  %v181_v19 = vld [vmem:[%s3349_s6 + $0x28] sm:$0xff]  ;;  %vm86_vm1 = vcmask 261120   ;;  %s2328_s18 = smov 8   ;;  %v82_v62 = vlaneseq }
   0xb   :  { %201 = vperm.xlu1 %2243, %v179_v16   ;;  %v182_v20 = vld [vmem:[%s3349_s6 + $0x30] sm:$0xff]  ;;  %v41_v21 = vld [vmem:[%s3347_s4 + $0x28] sm:$0xff]  ;;  %v183_v22 = vld [vmem:[%s3349_s6 + $0x38] sm:$0xff]  ;;  %s2329_s19 = smov 16   ;;  %s2330_s20 = smov 24   ;;  %v3354_v49 = vmov 0.0|0.0  }
   0xc   :  { %v42_v23 = vld [vmem:[%s3347_s4 + $0x30] sm:$0xff]  ;;  %v43_v24 = vld [vmem:[%s3347_s4 + $0x38] sm:$0xff]  ;;  %v44_v25 = vld [vmem:[%s3347_s4 + $0x40] sm:$0xff]  ;;  %s2331_s21 = smov 32   ;;  %s2332_s22 = smov 40   ;;  %v2607_v63 = vshrl.u32 %v82_v62, 7 }
   0xd   :  { %2097 = vmatpush3.bf16.msra.mxu1 %v2094_v10  ;;  %v45_v26 = vld [vmem:[%s3347_s4 + $0x48] sm:$0xff]  ;;  %v46_v27 = vld [vmem:[%s3347_s4 + $0x50] sm:$0xff]  ;;  %v47_v28 = vld [vmem:[%s3347_s4 + $0x58] sm:$0xff]  ;;  %s2334_s23 = smov 48   ;;  %s2335_s6 = smov 56   ;;  %vm2336_vm2 = vmmov 0  }
   0xe   :  { %2099 = vmatprep.subr.bf16.mxu1 %v2098_v17  ;;  %206 = vperm.xlu0 %2242, %v180_v18   ;;  %v36_v29 = vld [vmem:[%s3347_s4] sm:$0xff]  ;;  %v37_v30 = vld [vmem:[%s3347_s4 + $0x8] sm:$0xff]  ;;  %v38_v32 = vld [vmem:[%s3347_s4 + $0x10] sm:$0xff]  ;;  %v84_v0 = vsub.s32 0, %v2607_v63  ;;  %v3352_v6 = vmov 0.0   ;;  %s2338_s26 = smov 120  }
   0xf   :  { %211 = vperm.xlu1 %2243, %v181_v19   ;;  %v2078_v31 = vpack.c.bf16 %v37_v30, %v36_v29  ;;  %v39_v33 = vld [vmem:[%s3347_s4 + $0x18] sm:$0xff]  ;;  %v2483_v35 = vld [vmem:[%s3343_s0] sm:$0xff]  ;;  %v2490_v36 = vld [vmem:[%s3343_s0 + $0x8] sm:$0xff]  ;;  %vm617_vm3 = vcmask 64512   ;;  %vm626_vm4 = vcmask 130048   ;;  %vm635_vm5 = vcmask 195584  }
  0x10   :  { %v2082_v34 = vpack.c.bf16 %v39_v33, %v38_v32  ;;  %1869 = vmatprep.mubr.msk.f32.mxu0 %vm86_vm1, %v2483_v35  ;;  %3375 = vst [vmem:[#allocation8_spill] sm:$0xff] %v2490_v36  ;;  %v2617_v1 = vld [vmem:[%s3348_s5] sm:$0xff]  ;;  %v49_v18 = vld [vmem:[%s3347_s4 + $0x68] sm:$0xff]  ;;  %v50_v19 = vld [vmem:[%s3347_s4 + $0x70] sm:$0xff]  ;;  %vm652_vm6 = vcmask 326656   ;;  %vm661_vm7 = vcmask 392192  }
  0x11   :  { %2101 = vmatpush3.bf16.msra.mxu1 %v2098_v17  ;;  %2079 = vmatprep.subr.bf16.mxu0 %v2078_v31  ;;  %v2620_v2 = vrot.slane %v2617_v1, %v84_v0  ;;  %v48_v17 = vld [vmem:[%s3347_s4 + $0x60] sm:$0xff]  ;;  %vm670_vm8 = vcmask 457728   ;;  %s2339_s13 = smov 96  }
  0x12   :  { %216 = vperm.xlu0 %2242, %v182_v20   ;;  %2081 = vmatpush3.bf16.msra.mxu0 %v2078_v31  ;;  %v2102_v20 = vpack.c.bf16 %v49_v18, %v48_v17 }
  0x13   :  { %221 = vperm.xlu1 %2243, %v183_v22   ;;  %2083 = vmatprep.subr.bf16.mxu0 %v2082_v34 }
  0x14   :  { %1889 = vmatmul.mubr.msk.f32.vlgmr.msra.gmra.mrb[0].mxu1 %vm224_vm0, %v41_v21  ;;  %2118 = vmatprep.subr.bf16.mxu1 %v3354_v49  ;;  %v51_v21 = vld [vmem:[%s3347_s4 + $0x78] sm:$0xff] }
  0x15   :  { %1891 = vmatprep.mubr.msk.f32.mxu1 %vm224_vm0, %v42_v23  ;;  %v2106_v23 = vpack.c.bf16 %v51_v21, %v50_v19 }
  0x16   :  { %2085 = vmatpush3.bf16.msra.mxu0 %v2082_v34 }
  0x17   :  { %2103 = vmatprep.subr.bf16.mxu0 %v2102_v20 }
  0x18   :  { %1892 = vmatmul.mubr.msk.f32.gmra.mrb[2].mxu1 %vm224_vm0, %v43_v24  ;;  %v52_v24 = vld [vmem:[%s3347_s4 + $0x80] sm:$0xff] }
  0x19   :  { %1894 = vmatprep.mubr.msk.f32.mxu1 %vm224_vm0, %v44_v25  ;;  %1870 = vmatmul.mubr.msk.f32.vlgmr.msra.gmra.mrb[0].mxu0 %vm86_vm1, %v2490_v36  ;;  %v53_v25 = vld [vmem:[%s3347_s4 + $0x88] sm:$0xff] }
  0x1a   :  { %2105 = vmatpush3.bf16.msra.mxu0 %v2102_v20  ;;  %v355_v20 = vld [vmem:[%s3345_s2 + $0x8] sm:$0xff] }
  0x1b   :  { %2107 = vmatprep.subr.bf16.mxu0 %v2106_v23 }
  0x1c   :  { %1895 = vmatmul.mubr.msk.f32.gmra.mrb[4].mxu1 %vm224_vm0, %v45_v26  ;;  %v354_v26 = vld [vmem:[%s3345_s2] sm:$0xff] }
  0x1d   :  { %1897 = vmatprep.mubr.msk.f32.mxu1 %vm224_vm0, %v46_v27  ;;  %1916 = vmatprep.mubr.msk.f32.mxu0 %vm224_vm0, %v354_v26 }
  0x1e   :  { %2109 = vmatpush3.bf16.msra.mxu0 %v2106_v23 }
  0x20   :  { %1898 = vmatmul.mubr.msk.f32.gmra.mrb[6].mxu1 %vm224_vm0, %v47_v28 }
  0x21   :  { %1935 = vmatprep.mubr.msk.f32.mxu1 %vm2336_vm2, %v3352_v6 }
  0x84   :  { %v187_v37 = vpop.permute.xlu0 %186 }
  0x85   :  { %v197_v50 = vpop.permute.xlu1 %196 }
  0x89   :  { %v192_v38 = vpop.permute.xlu0 %191 }
  0x8a   :  { %v202_v51 = vpop.permute.xlu1 %201 }
  0x8d   :  { %v207_v55 = vpop.permute.xlu0 %206 }
  0x8e   :  { %v212_v54 = vpop.permute.xlu1 %211 }
  0x91   :  { %v217_v59 = vpop.permute.xlu0 %216 }
  0x92   :  { %v222_v58 = vpop.permute.xlu1 %221 }
  0xe7   :  { %v1890_v39 = vpop.f32.mrb[0].mxu1 }
  0xe8   :  { %v2494_v40 = vadd.f32 %v1890_v39, %v192_v38  ;;  %v315_v41 = vpop.f32.mrb[1].mxu1 }
  0xe9   :  { %v2496_v42 = vadd.f32 %v315_v41, %v187_v37  ;;  %v2110_v37 = vpack.c.bf16 %v53_v25, %v52_v24  ;;  %v2724_v41 = vld [vmem:[%s3347_s4 + $0xe8] sm:$0xff] }
  0xea   :  { %451 = vrot.lane.b32.xlu1 %v2494_v40, %s2328_s18 }
  0xeb   :  { %449 = vrot.lane.b32.xlu0 %v2496_v42, %s2328_s18  ;;  %v1893_v43 = vpop.f32.mrb[2].mxu1  ;;  %2111 = vmatprep.subr.bf16.mxu0 %v2110_v37 }
  0xec   :  { %v325_v44 = vpop.f32.mrb[3].mxu1  ;;  %v2527_v52 = vadd.f32 %v1893_v43, %v202_v51  ;;  %v1871_v3 = vpop.f32.mrb[0].mxu0  ;;  %v54_v43 = vld [vmem:[%s3347_s4 + $0x90] sm:$0xff]  ;;  %2113 = vmatpush3.bf16.msra.mxu0 %v2110_v37 }
  0xed   :  { %v2529_v53 = vadd.f32 %v325_v44, %v197_v50  ;;  %v2624_v4 = vpop.f32.mrb[1].mxu0  ;;  %v2629_v5 = vadd.f32 %v1871_v3, %v2620_v2  ;;  %v55_v44 = vld [vmem:[%s3347_s4 + $0x98] sm:$0xff] }
  0xee   :  { %475 = vrot.lane.b32.xlu1 %v2494_v40, %s2329_s19 }
  0xef   :  { %v1896_v45 = vpop.f32.mrb[4].mxu1  ;;  %473 = vrot.lane.b32.xlu0 %v2496_v42, %s2329_s19  ;;  %3376 = vst [vmem:[#allocation9_spill] sm:$0xff] %v2629_v5 }
  0xf0   :  { %v335_v46 = vpop.f32.mrb[5].mxu1  ;;  %v2559_v56 = vadd.f32 %v1896_v45, %v212_v54 }
  0xf1   :  { %v2561_v57 = vadd.f32 %v335_v46, %v207_v55 }
  0xf2   :  { %499 = vrot.lane.b32.xlu1 %v2494_v40, %s2330_s20 }
  0xf3   :  { %v1899_v47 = vpop.f32.mrb[6].mxu1  ;;  %497 = vrot.lane.b32.xlu0 %v2496_v42, %s2330_s20 }
  0xf4   :  { %v345_v48 = vpop.f32.mrb[7].mxu1  ;;  %v2591_v60 = vadd.f32 %v1899_v47, %v222_v58 }
  0xf5   :  { %v2593_v61 = vadd.f32 %v345_v48, %v217_v59  ;;  %v2739_v48 = vld [vmem:[%s3347_s4 + $0xe0] sm:$0xff]  ;;  %v2114_v59 = vpack.c.bf16 %v55_v44, %v54_v43  ;;  %v2806_v44 = vld [vmem:[%s3347_s4 + $0xf8] sm:$0xff] }
  0xf6   :  { %523 = vrot.lane.b32.xlu1 %v2494_v40, %s2331_s21 }
  0xf7   :  { %521 = vrot.lane.b32.xlu0 %v2496_v42, %s2331_s21  ;;  %2115 = vmatprep.subr.bf16.mxu0 %v2114_v59 }
  0xf8   :  { %2117 = vmatpush3.bf16.msra.mxu0 %v2114_v59 }
  0xf9   :  { %2130 = vmatprep.subr.bf16.mxu0 %v3354_v49 }
  0xfa   :  { %547 = vrot.lane.b32.xlu1 %v2494_v40, %s2332_s22 }
  0xfb   :  { %545 = vrot.lane.b32.xlu0 %v2496_v42, %s2332_s22  ;;  %1917 = vmatmul.mubr.msk.f32.vlgmr.msra.gmra.mrb[2].mxu0 %vm224_vm0, %v355_v20 }
  0xfc   :  { %1954 = vmatprep.mubr.msk.f32.mxu0 %vm2336_vm2, %v3352_v6 }
  0xfe   :  { %571 = vrot.lane.b32.xlu1 %v2494_v40, %s2334_s23 }
  0xff   :  { %569 = vrot.lane.b32.xlu0 %v2496_v42, %s2334_s23 }
 0x102   :  { %595 = vrot.lane.b32.xlu1 %v2494_v40, %s2335_s6 }
 0x103   :  { %593 = vrot.lane.b32.xlu0 %v2496_v42, %s2335_s6 }
 0x106   :  { %455 = vrot.lane.b32.xlu1 %v2527_v52, %s2328_s18 }
 0x107   :  { %453 = vrot.lane.b32.xlu0 %v2529_v53, %s2328_s18 }
 0x10a   :  { %479 = vrot.lane.b32.xlu1 %v2527_v52, %s2329_s19 }
 0x10b   :  { %477 = vrot.lane.b32.xlu0 %v2529_v53, %s2329_s19 }
 0x10e   :  { %503 = vrot.lane.b32.xlu1 %v2527_v52, %s2330_s20 }
 0x10f   :  { %501 = vrot.lane.b32.xlu0 %v2529_v53, %s2330_s20 }
 0x112   :  { %527 = vrot.lane.b32.xlu1 %v2527_v52, %s2331_s21 }
 0x113   :  { %525 = vrot.lane.b32.xlu0 %v2529_v53, %s2331_s21 }
 0x116   :  { %551 = vrot.lane.b32.xlu1 %v2527_v52, %s2332_s22 }
 0x117   :  { %549 = vrot.lane.b32.xlu0 %v2529_v53, %s2332_s22 }
 0x11a   :  { %575 = vrot.lane.b32.xlu1 %v2527_v52, %s2334_s23 }
 0x11b   :  { %573 = vrot.lane.b32.xlu0 %v2529_v53, %s2334_s23 }
 0x11e   :  { %599 = vrot.lane.b32.xlu1 %v2527_v52, %s2335_s6 }
 0x11f   :  { %597 = vrot.lane.b32.xlu0 %v2529_v53, %s2335_s6 }
 0x122   :  { %459 = vrot.lane.b32.xlu1 %v2559_v56, %s2328_s18 }
 0x123   :  { %457 = vrot.lane.b32.xlu0 %v2561_v57, %s2328_s18 }
 0x126   :  { %483 = vrot.lane.b32.xlu1 %v2559_v56, %s2329_s19 }
 0x127   :  { %481 = vrot.lane.b32.xlu0 %v2561_v57, %s2329_s19 }
 0x12a   :  { %507 = vrot.lane.b32.xlu1 %v2559_v56, %s2330_s20 }
 0x12b   :  { %505 = vrot.lane.b32.xlu0 %v2561_v57, %s2330_s20 }
 0x12e   :  { %531 = vrot.lane.b32.xlu1 %v2559_v56, %s2331_s21 }
 0x12f   :  { %529 = vrot.lane.b32.xlu0 %v2561_v57, %s2331_s21 }
 0x132   :  { %555 = vrot.lane.b32.xlu1 %v2559_v56, %s2332_s22 }
 0x133   :  { %553 = vrot.lane.b32.xlu0 %v2561_v57, %s2332_s22 }
 0x136   :  { %579 = vrot.lane.b32.xlu1 %v2559_v56, %s2334_s23 }
 0x137   :  { %577 = vrot.lane.b32.xlu0 %v2561_v57, %s2334_s23 }
 0x13a   :  { %603 = vrot.lane.b32.xlu1 %v2559_v56, %s2335_s6 }
 0x13b   :  { %601 = vrot.lane.b32.xlu0 %v2561_v57, %s2335_s6 }
 0x13e   :  { %463 = vrot.lane.b32.xlu1 %v2591_v60, %s2328_s18 }
 0x13f   :  { %461 = vrot.lane.b32.xlu0 %v2593_v61, %s2328_s18 }
 0x142   :  { %487 = vrot.lane.b32.xlu1 %v2591_v60, %s2329_s19 }
 0x143   :  { %485 = vrot.lane.b32.xlu0 %v2593_v61, %s2329_s19 }
 0x146   :  { %511 = vrot.lane.b32.xlu1 %v2591_v60, %s2330_s20 }
 0x147   :  { %509 = vrot.lane.b32.xlu0 %v2593_v61, %s2330_s20 }
 0x14a   :  { %535 = vrot.lane.b32.xlu1 %v2591_v60, %s2331_s21 }
 0x14b   :  { %533 = vrot.lane.b32.xlu0 %v2593_v61, %s2331_s21 }
 0x14e   :  { %559 = vrot.lane.b32.xlu1 %v2591_v60, %s2332_s22 }
 0x14f   :  { %557 = vrot.lane.b32.xlu0 %v2593_v61, %s2332_s22 }
 0x152   :  { %583 = vrot.lane.b32.xlu1 %v2591_v60, %s2334_s23 }
 0x153   :  { %581 = vrot.lane.b32.xlu0 %v2593_v61, %s2334_s23 }
 0x156   :  { %607 = vrot.lane.b32.xlu1 %v2591_v60, %s2335_s6 }
 0x157   :  { %605 = vrot.lane.b32.xlu0 %v2593_v61, %s2335_s6 }
 0x15a   :  { %919 = vrot.lane.b32.xlu1 %v2496_v42, %s2338_s26 }
 0x15c   :  { %v2643_v7 = vpop.permute.xlu1 %451 }
 0x15d   :  { %v2645_v8 = vpop.permute.xlu0 %449  ;;  %v619_v22 = vsel %vm617_vm3, %v2494_v40, %v2643_v7 }
 0x15e   :  { %921 = vrot.lane.b32.xlu1 %v2494_v40, %s2338_s26  ;;  %v618_v27 = vsel %vm617_vm3, %v2496_v42, %v2645_v8 }
 0x160   :  { %v2649_v9 = vpop.permute.xlu1 %475 }
 0x161   :  { %v2651_v10 = vpop.permute.xlu0 %473  ;;  %v628_v28 = vsel %vm626_vm4, %v619_v22, %v2649_v9 }
 0x162   :  { %923 = vrot.lane.b32.xlu1 %v2529_v53, %s2338_s26  ;;  %v627_v30 = vsel %vm626_vm4, %v618_v27, %v2651_v10 }
 0x164   :  { %v2655_v11 = vpop.permute.xlu1 %499 }
 0x165   :  { %3377 = vst [vmem:[#allocation10_spill] sm:$0xff] %v2655_v11  ;;  %v2657_v12 = vpop.permute.xlu0 %497  ;;  %v637_v31 = vsel %vm635_vm5, %v628_v28, %v2655_v11 }
 0x166   :  { %3378 = vst [vmem:[#allocation11_spill] sm:$0xff] %v2657_v12  ;;  %925 = vrot.lane.b32.xlu1 %v2527_v52, %s2338_s26  ;;  %v636_v33 = vsel %vm635_vm5, %v627_v30, %v2657_v12 }
 0x168   :  { %v2661_v13 = vpop.permute.xlu1 %523 }
 0x169   :  { %3379 = vst [vmem:[#allocation12_spill] sm:$0xff] %v2661_v13  ;;  %v2663_v14 = vpop.permute.xlu0 %521  ;;  %v645_v34 = vsel %vm86_vm1, %v637_v31, %v2661_v13 }
 0x16a   :  { %3380 = vst [vmem:[#allocation13_spill] sm:$0xff] %v2663_v14  ;;  %927 = vrot.lane.b32.xlu1 %v2561_v57, %s2338_s26  ;;  %v644_v38 = vsel %vm86_vm1, %v636_v33, %v2663_v14 }
 0x16c   :  { %v2667_v15 = vpop.permute.xlu1 %547 }
 0x16d   :  { %3381 = vst [vmem:[#allocation14_spill] sm:$0xff] %v2667_v15  ;;  %v2669_v16 = vpop.permute.xlu0 %545  ;;  %v654_v39 = vsel %vm652_vm6, %v645_v34, %v2667_v15 }
 0x16e   :  { %3382 = vst [vmem:[#allocation15_spill] sm:$0xff] %v2669_v16  ;;  %929 = vrot.lane.b32.xlu1 %v2559_v56, %s2338_s26  ;;  %v653_v45 = vsel %vm652_vm6, %v644_v38, %v2669_v16 }
 0x170   :  { %v2702_v29 = vpop.permute.xlu1 %571 }
 0x171   :  { %3383 = vst [vmem:[#allocation16_spill] sm:$0xff] %v2702_v29  ;;  %v2709_v32 = vpop.permute.xlu0 %569  ;;  %v663_v46 = vsel %vm661_vm7, %v654_v39, %v2702_v29 }
 0x172   :  { %3384 = vst [vmem:[#allocation17_spill] sm:$0xff] %v2709_v32  ;;  %931 = vrot.lane.b32.xlu1 %v2593_v61, %s2338_s26  ;;  %v662_v50 = vsel %vm661_vm7, %v653_v45, %v2709_v32  ;;  %v3395_v32 = vmov 0.0|0.0  }
 0x174   :  { %v596_v47 = vpop.permute.xlu1 %595 }
 0x175   :  { %v672_v51 = vsel %vm670_vm8, %v663_v46, %v596_v47  ;;  %v594_v54 = vpop.permute.xlu0 %593 }
 0x176   :  { %v680_v55 = vmul.f32 %v672_v51, %v2724_v41  ;;  %v671_v58 = vsel %vm670_vm8, %v662_v50, %v594_v54  ;;  %933 = vrot.lane.b32.xlu1 %v2591_v60, %s2338_s26  ;;  %v2815_v50 = vld [vmem:[%s3347_s4 + $0xf0] sm:$0xff] }
 0x177   :  { %v679_v62 = vmul.f32 %v671_v58, %v2739_v48 }
 0x178   :  { %v2749_v0 = vpop.permute.xlu1 %455 }
 0x179   :  { %v2119_v3 = vpack.c.bf16 %v680_v55, %v679_v62  ;;  %v2751_v17 = vpop.permute.xlu0 %453  ;;  %v621_v26 = vsel %vm617_vm3, %v2527_v52, %v2749_v0 }
 0x17a   :  { %1367 = vrot.lane.b32.xlu1 %v2483_v35, %s2331_s21  ;;  %v620_v27 = vsel %vm617_vm3, %v2529_v53, %v2751_v17 }
 0x17b   :  { %2120 = vmatpush3.bf16.msra.mxu1 %v2119_v3 }
 0x17c   :  { %v2755_v18 = vpop.permute.xlu1 %479  ;;  %2121 = vmatprep.subr.bf16.mxu1 %v3354_v49 }
 0x17d   :  { %3385 = vst [vmem:[#allocation18_spill] sm:$0xff] %v2755_v18  ;;  %v2758_v19 = vpop.permute.xlu0 %477  ;;  %v630_v28 = vsel %vm626_vm4, %v621_v26, %v2755_v18  ;;  %v160_v18 = vadd.f32 %v2624_v4, %v2620_v2 }
 0x17e   :  { %3386 = vst [vmem:[#allocation19_spill] sm:$0xff] %v2758_v19  ;;  %v629_v31 = vsel %vm626_vm4, %v620_v27, %v2758_v19 }
 0x180   :  { %v2764_v21 = vpop.permute.xlu1 %503 }
 0x181   :  { %3387 = vst [vmem:[#allocation20_spill] sm:$0xff] %v2764_v21  ;;  %v2767_v22 = vpop.permute.xlu0 %501  ;;  %v639_v33 = vsel %vm635_vm5, %v630_v28, %v2764_v21 }
 0x182   :  { %3388 = vst [vmem:[#allocation21_spill] sm:$0xff] %v2767_v22  ;;  %v638_v37 = vsel %vm635_vm5, %v629_v31, %v2767_v22 }
 0x184   :  { %v2771_v35 = vpop.permute.xlu1 %527 }
 0x185   :  { %3389 = vst [vmem:[#allocation22_spill] sm:$0xff] %v2771_v35  ;;  %v2773_v23 = vpop.permute.xlu0 %525  ;;  %v647_v38 = vsel %vm86_vm1, %v639_v33, %v2771_v35 }
 0x186   :  { %3390 = vst [vmem:[#allocation23_spill] sm:$0xff] %v2773_v23  ;;  %v646_v39 = vsel %vm86_vm1, %v638_v37, %v2773_v23 }
 0x188   :  { %v2775_v24 = vpop.permute.xlu1 %551 }
 0x189   :  { %3391 = vst [vmem:[#allocation24_spill] sm:$0xff] %v2775_v24  ;;  %v2777_v25 = vpop.permute.xlu0 %549  ;;  %v656_v43 = vsel %vm652_vm6, %v647_v38, %v2775_v24 }
 0x18a   :  { %3392 = vst [vmem:[#allocation25_spill] sm:$0xff] %v2777_v25  ;;  %v655_v45 = vsel %vm652_vm6, %v646_v39, %v2777_v25 }
 0x18c   :  { %v2787_v30 = vpop.permute.xlu1 %575 }
 0x18d   :  { %3393 = vst [vmem:[#allocation26_spill] sm:$0xff] %v2787_v30  ;;  %v2793_v34 = vpop.permute.xlu0 %573  ;;  %v665_v46 = vsel %vm661_vm7, %v656_v43, %v2787_v30 }
 0x18e   :  { %3394 = vst [vmem:[#allocation27_spill] sm:$0xff] %v2793_v34  ;;  %v664_v51 = vsel %vm661_vm7, %v655_v45, %v2793_v34 }
 0x190   :  { %v600_v47 = vpop.permute.xlu1 %599 }
 0x191   :  { %v674_v54 = vsel %vm670_vm8, %v665_v46, %v600_v47  ;;  %v598_v55 = vpop.permute.xlu0 %597 }
 0x192   :  { %v682_v58 = vmul.f32 %v674_v54, %v2806_v44  ;;  %v673_v59 = vsel %vm670_vm8, %v664_v51, %v598_v55 }
 0x193   :  { %v681_v62 = vmul.f32 %v673_v59, %v2815_v50 }
 0x194   :  { %v2823_v3 = vpop.permute.xlu1 %459 }
 0x195   :  { %v2122_v20 = vpack.c.bf16 %v682_v58, %v681_v62  ;;  %v2825_v26 = vpop.permute.xlu0 %457  ;;  %v623_v45 = vsel %vm617_vm3, %v2559_v56, %v2823_v3 }
 0x196   :  { %v622_v46 = vsel %vm617_vm3, %v2561_v57, %v2825_v26 }
 0x197   :  { %2123 = vmatpush3.bf16.msra.mxu1 %v2122_v20 }
 0x198   :  { %v2827_v27 = vpop.permute.xlu1 %483  ;;  %2124 = vmatprep.subr.bf16.mxu1 %v3354_v49 }
 0x199   :  { %v2830_v28 = vpop.permute.xlu0 %481  ;;  %v632_v47 = vsel %vm626_vm4, %v623_v45, %v2827_v27 }
 0x19a   :  { %v631_v54 = vsel %vm626_vm4, %v622_v46, %v2830_v28  ;;  %v2871_v46 = vld [vmem:[%s3347_s4 + $0x108] sm:$0xff] }
 0x19c   :  { %v2832_v31 = vpop.permute.xlu1 %507 }
 0x19d   :  { %v2834_v33 = vpop.permute.xlu0 %505  ;;  %v641_v55 = vsel %vm635_vm5, %v632_v47, %v2832_v31 }
 0x19e   :  { %v640_v59 = vsel %vm635_vm5, %v631_v54, %v2834_v33 }
 0x1a0   :  { %v2836_v37 = vpop.permute.xlu1 %531 }
 0x1a1   :  { %v2838_v38 = vpop.permute.xlu0 %529  ;;  %v649_v62 = vsel %vm86_vm1, %v641_v55, %v2836_v37  ;;  %v2880_v55 = vld [vmem:[%s3347_s4 + $0x100] sm:$0xff] }
 0x1a2   :  { %v648_v20 = vsel %vm86_vm1, %v640_v59, %v2838_v38 }
 0x1a4   :  { %v2840_v39 = vpop.permute.xlu1 %555 }
 0x1a5   :  { %v2842_v43 = vpop.permute.xlu0 %553  ;;  %v658_v45 = vsel %vm652_vm6, %v649_v62, %v2840_v39 }
 0x1a6   :  { %v657_v47 = vsel %vm652_vm6, %v648_v20, %v2842_v43 }
 0x1a8   :  { %v2852_v51 = vpop.permute.xlu1 %579 }
 0x1a9   :  { %v2858_v58 = vpop.permute.xlu0 %577  ;;  %v667_v54 = vsel %vm661_vm7, %v658_v45, %v2852_v51 }
 0x1aa   :  { %v666_v59 = vsel %vm661_vm7, %v657_v47, %v2858_v58 }
 0x1ac   :  { %v604_v6 = vpop.permute.xlu1 %603 }
 0x1ad   :  { %v676_v62 = vsel %vm670_vm8, %v667_v54, %v604_v6  ;;  %v602_v49 = vpop.permute.xlu0 %601 }
 0x1ae   :  { %v684_v36 = vmul.f32 %v676_v62, %v2871_v46  ;;  %v675_v5 = vsel %vm670_vm8, %v666_v59, %v602_v49 }
 0x1af   :  { %v683_v20 = vmul.f32 %v675_v5, %v2880_v55 }
 0x1b0   :  { %v2888_v34 = vpop.permute.xlu1 %463 }
 0x1b1   :  { %v2125_v45 = vpack.c.bf16 %v684_v36, %v683_v20  ;;  %v462_v30 = vpop.permute.xlu0 %461  ;;  %v625_v36 = vsel %vm617_vm3, %v2591_v60, %v2888_v34 }
 0x1b2   :  { %v624_v5 = vsel %vm617_vm3, %v2593_v61, %v462_v30 }
 0x1b3   :  { %2126 = vmatpush3.bf16.msra.mxu1 %v2125_v45 }
 0x1b4   :  { %v2890_v25 = vpop.permute.xlu1 %487  ;;  %2127 = vmatprep.subr.bf16.mxu1 %v3395_v32 }
 0x1b5   :  { %v486_v24 = vpop.permute.xlu0 %485  ;;  %v634_v59 = vsel %vm626_vm4, %v625_v36, %v2890_v25  ;;  %v2920_v36 = vld [vmem:[%s3347_s4 + $0x118] sm:$0xff] }
 0x1b6   :  { %v633_v45 = vsel %vm626_vm4, %v624_v5, %v486_v24 }
 0x1b8   :  { %v2893_v47 = vpop.permute.xlu1 %511 }
 0x1b9   :  { %v510_v6 = vpop.permute.xlu0 %509  ;;  %v643_v16 = vsel %vm635_vm5, %v634_v59, %v2893_v47 }
 0x1ba   :  { %v642_v15 = vsel %vm635_vm5, %v633_v45, %v510_v6 }
 0x1bc   :  { %v2895_v54 = vpop.permute.xlu1 %535 }
 0x1bd   :  { %v534_v62 = vpop.permute.xlu0 %533  ;;  %v651_v35 = vsel %vm86_vm1, %v643_v16, %v2895_v54  ;;  %v2928_v16 = vld [vmem:[%s3347_s4 + $0x110] sm:$0xff] }
 0x1be   :  { %v650_v22 = vsel %vm86_vm1, %v642_v15, %v534_v62 }
 0x1c0   :  { %v2897_v29 = vpop.permute.xlu1 %559 }
 0x1c1   :  { %v558_v49 = vpop.permute.xlu0 %557  ;;  %v660_v14 = vsel %vm652_vm6, %v651_v35, %v2897_v29 }
 0x1c2   :  { %v659_v5 = vsel %vm652_vm6, %v650_v22, %v558_v49 }
 0x1c4   :  { %v2906_v20 = vpop.permute.xlu1 %583 }
 0x1c5   :  { %v582_v23 = vpop.permute.xlu0 %581  ;;  %v669_v59 = vsel %vm661_vm7, %v660_v14, %v2906_v20 }
 0x1c6   :  { %v668_v15 = vsel %vm661_vm7, %v659_v5, %v582_v23 }
 0x1c8   :  { %v608_v21 = vpop.permute.xlu1 %607 }
 0x1c9   :  { %v678_v35 = vsel %vm670_vm8, %v669_v59, %v608_v21  ;;  %v606_v45 = vpop.permute.xlu0 %605  ;;  %v3396_v21 = vmov 0.0  }
 0x1ca   :  { %v686_v13 = vmul.f32 %v678_v35, %v2920_v36  ;;  %v677_v19 = vsel %vm670_vm8, %v668_v15, %v606_v45 }
 0x1cb   :  { %v685_v22 = vmul.f32 %v677_v19, %v2928_v16 }
 0x1cc   :  { %v2935_v12 = vpop.permute.xlu1 %919 }
 0x1cd   :  { %v2128_v14 = vpack.c.bf16 %v686_v13, %v685_v22 }
 0x1cf   :  { %2129 = vmatpush3.bf16.msra.mxu1 %v2128_v14 }
 0x1d0   :  { %v2939_v11 = vpop.permute.xlu1 %921  ;;  %2142 = vmatprep.subr.bf16.mxu1 %v3395_v32 }
 0x1d2   :  { %1936 = vmatmul.mubr.msk.f32.vlgmr.msra.gmra.mrb[8].mxu1 %vm224_vm0, %v160_v18 }
 0x1d3   :  { %1973 = vmatprep.mubr.msk.f32.mxu1 %vm2336_vm2, %v3396_v21 }
 0x1d4   :  { %v2945_v5 = vpop.permute.xlu1 %923 }
 0x1d8   :  { %v2947_v59 = vpop.permute.xlu1 %925 }
 0x1dc   :  { %v928_v19 = vpop.permute.xlu1 %927 }
 0x1dd   :  { %v947_v13 = vsel %vm617_vm3, %v928_v19, %v2561_v57 }
 0x1de   :  { %v955_v2 = vsel %vm626_vm4, %v947_v13, %v2825_v26 }
 0x1df   :  { %v963_v4 = vsel %vm635_vm5, %v955_v2, %v2830_v28 }
 0x1e0   :  { %v971_v18 = vsel %vm86_vm1, %v963_v4, %v2834_v33  ;;  %v930_v15 = vpop.permute.xlu1 %929 }
 0x1e1   :  { %v979_v35 = vsel %vm652_vm6, %v971_v18, %v2838_v38  ;;  %v948_v45 = vsel %vm617_vm3, %v930_v15, %v2559_v56 }
 0x1e2   :  { %v956_v22 = vsel %vm626_vm4, %v948_v45, %v2823_v3  ;;  %v987_v57 = vsel %vm661_vm7, %v979_v35, %v2842_v43 }
 0x1e3   :  { %v964_v26 = vsel %vm635_vm5, %v956_v22, %v2827_v27  ;;  %v995_v28 = vsel %vm670_vm8, %v987_v57, %v2858_v58 }
 0x1e4   :  { %v972_v33 = vsel %vm86_vm1, %v964_v26, %v2832_v31  ;;  %v932_v14 = vpop.permute.xlu1 %931  ;;  %v2983_v13 = vmul.f32 %v995_v28, %v2880_v55 }
 0x1e5   :  { %v980_v38 = vsel %vm652_vm6, %v972_v33, %v2836_v37  ;;  %v949_v56 = vsel %vm617_vm3, %v932_v14, %v2593_v61 }
 0x1e6   :  { %v957_v3 = vsel %vm626_vm4, %v949_v56, %v462_v30  ;;  %v988_v43 = vsel %vm661_vm7, %v980_v38, %v2840_v39 }
 0x1e7   :  { %v965_v27 = vsel %vm635_vm5, %v957_v3, %v486_v24  ;;  %v996_v58 = vsel %vm670_vm8, %v988_v43, %v2852_v51 }
 0x1e8   :  { %v973_v19 = vsel %vm86_vm1, %v965_v27, %v510_v6  ;;  %v934_v31 = vpop.permute.xlu1 %933  ;;  %v2986_v37 = vmul.f32 %v996_v58, %v2871_v46  ;;  %v32_v58 = vld [vmem:[%s3346_s3] sm:$0xff] }
 0x1e9   :  { %v981_v61 = vsel %vm652_vm6, %v973_v19, %v534_v62  ;;  %v950_v30 = vsel %vm617_vm3, %v934_v31, %v2591_v60 }
 0x1ea   :  { %v958_v24 = vsel %vm626_vm4, %v950_v30, %v2888_v34  ;;  %v2161_v39 = vpack.c.bf16 %v2986_v37, %v2983_v13  ;;  %v989_v51 = vsel %vm661_vm7, %v981_v61, %v558_v49 }
 0x1eb   :  { %v966_v6 = vsel %vm635_vm5, %v958_v24, %v2890_v25  ;;  %v997_v2 = vsel %vm670_vm8, %v989_v51, %v582_v23  ;;  %v3017_v25 = vpack.c.bf16 %v2724_v41, %v2739_v48  ;;  %v3044_v24 = vpack.c.bf16 %v2806_v44, %v2815_v50 }
 0x1ec   :  { %v974_v4 = vsel %vm86_vm1, %v966_v6, %v2893_v47  ;;  %v3008_v18 = vmul.f32 %v997_v2, %v2928_v16  ;;  %v3050_v51 = vpack.c.bf16 %v2871_v46, %v2880_v55  ;;  %v3055_v6 = vpack.c.bf16 %v2920_v36, %v2928_v16 }
 0x1ed   :  { %v982_v62 = vsel %vm652_vm6, %v974_v4, %v2895_v54  ;;  %2144 = vmatpush3.bf16.msra.mxu1 %v3017_v25  ;;  %v1918_v54 = vpop.f32.mrb[2].mxu0  ;;  %v944_v2 = vsel %vm617_vm3, %v2939_v11, %v2494_v40  ;;  %v943_v4 = vsel %vm617_vm3, %v2935_v12, %v2496_v42 }
 0x1ee   :  { %v990_v60 = vsel %vm661_vm7, %v982_v62, %v2897_v29  ;;  %2145 = vmatprep.subr.bf16.mxu1 %v3395_v32  ;;  %v358_v29 = vsub.s32 1, %v2607_v63  ;;  %v432_v15 = vpop.f32.mrb[3].mxu0  ;;  %v952_v62 = vsel %vm626_vm4, %v944_v2, %v2643_v7  ;;  %v3411_v2 = vld [vmem:[#allocation17_spill] sm:$0xff] }
 0x1ef   :  { %v998_v34 = vsel %vm670_vm8, %v990_v60, %v2906_v20  ;;  %v946_v60 = vsel %vm617_vm3, %v2947_v59, %v2527_v52  ;;  %v960_v40 = vsel %vm635_vm5, %v952_v62, %v2649_v9  ;;  %v3397_v52 = vld [vmem:[#allocation10_spill] sm:$0xff]  ;;  %v3400_v9 = vld [vmem:[#allocation19_spill] sm:$0xff]  ;;  %v3412_v62 = vld [vmem:[#allocation25_spill] sm:$0xff] }
 0x1f0   :  { %v3011_v49 = vmul.f32 %v998_v34, %v2920_v36  ;;  %v359_v47 = vrot.slane %v2617_v1, %v358_v29  ;;  %v951_v34 = vsel %vm626_vm4, %v943_v4, %v2645_v8  ;;  %v945_v29 = vsel %vm617_vm3, %v2945_v5, %v2529_v53  ;;  %v3398_v8 = vld [vmem:[#allocation18_spill] sm:$0xff]  ;;  %v3399_v53 = vld [vmem:[#allocation11_spill] sm:$0xff] }
 0x1f1   :  { %2147 = vmatpush3.bf16.msra.mxu1 %v3044_v24  ;;  %v954_v42 = vsel %vm626_vm4, %v946_v60, %v2749_v0  ;;  %v959_v7 = vsel %vm635_vm5, %v951_v34, %v2651_v10  ;;  %v953_v11 = vsel %vm626_vm4, %v945_v29, %v2751_v17  ;;  %v968_v12 = vsel %vm86_vm1, %v960_v40, %v3397_v52  ;;  %v3414_v52 = vld [vmem:[#allocation27_spill] sm:$0xff] }
 0x1f2   :  { %v2164_v23 = vpack.c.bf16 %v3011_v49, %v3008_v18  ;;  %v3023_v20 = vadd.f32 %v1918_v54, %v359_v47  ;;  %v433_v35 = vadd.f32 %v432_v15, %v359_v47  ;;  %2148 = vmatprep.subr.bf16.mxu1 %v3395_v32  ;;  %v962_v59 = vsel %vm635_vm5, %v954_v42, %v3398_v8  ;;  %v3401_v15 = vld [vmem:[#allocation12_spill] sm:$0xff]  ;;  %v3413_v42 = vld [vmem:[#allocation26_spill] sm:$0xff] }
 0x1f3   :  { %v967_v5 = vsel %vm86_vm1, %v959_v7, %v3399_v53  ;;  %v961_v54 = vsel %vm635_vm5, %v953_v11, %v3400_v9  ;;  %v976_v10 = vsel %vm652_vm6, %v968_v12, %v3401_v15 }
 0x1f4   :  { %v687_v45 = vmul.f32 %v433_v35, %v2739_v48  ;;  %v688_v22 = vmul.f32 %v433_v35, %v2724_v41  ;;  %v689_v57 = vmul.f32 %v433_v35, %v2815_v50  ;;  %v690_v26 = vmul.f32 %v433_v35, %v2806_v44 }
 0x1f5   :  { %v691_v14 = vmul.f32 %v433_v35, %v2880_v55  ;;  %v692_v38 = vmul.f32 %v433_v35, %v2871_v46  ;;  %v693_v3 = vmul.f32 %v433_v35, %v2928_v16  ;;  %v694_v43 = vmul.f32 %v433_v35, %v2920_v36  ;;  %2150 = vmatpush3.bf16.msra.mxu1 %v3050_v51  ;;  %v3402_v35 = vld [vmem:[#allocation20_spill] sm:$0xff] }
 0x1f6   :  { %v2131_v28 = vpack.c.bf16 %v688_v22, %v687_v45  ;;  %v2134_v33 = vpack.c.bf16 %v690_v26, %v689_v57  ;;  %2151 = vmatprep.subr.bf16.mxu1 %v3395_v32  ;;  %v970_v17 = vsel %vm86_vm1, %v962_v59, %v3402_v35  ;;  %v3403_v22 = vld [vmem:[#allocation13_spill] sm:$0xff]  ;;  %v1007_v29 = vmul.f32 %v3023_v20, %v2739_v48 }
 0x1f7   :  { %v2137_v56 = vpack.c.bf16 %v692_v38, %v691_v14  ;;  %v2140_v27 = vpack.c.bf16 %v694_v43, %v693_v3  ;;  %v975_v57 = vsel %vm652_vm6, %v967_v5, %v3403_v22  ;;  %v3404_v26 = vld [vmem:[#allocation21_spill] sm:$0xff]  ;;  %v3406_v38 = vld [vmem:[#allocation14_spill] sm:$0xff]  ;;  %v3407_v3 = vld [vmem:[#allocation23_spill] sm:$0xff]  ;;  %v1008_v40 = vmul.f32 %v3023_v20, %v2724_v41 }
 0x1f8   :  { %2132 = vmatpush3.bf16.msra.mxu0 %v2131_v28  ;;  %v969_v28 = vsel %vm86_vm1, %v961_v54, %v3404_v26  ;;  %v1009_v5 = vmul.f32 %v3023_v20, %v2815_v50  ;;  %v1010_v9 = vmul.f32 %v3023_v20, %v2806_v44  ;;  %v1013_v15 = vmul.f32 %v3023_v20, %v2928_v16  ;;  %v3415_v16 = vld [vmem:[#allocation9_spill] sm:$0xff]  ;;  %v59_v26 = vld [vmem:[%s3347_s4 + $0xb8] sm:$0xff] }
 0x1f9   :  { %2133 = vmatprep.subr.bf16.mxu0 %v3395_v32  ;;  %2153 = vmatpush3.bf16.msra.mxu1 %v3055_v6  ;;  %v977_v43 = vsel %vm652_vm6, %v969_v28, %v3407_v3  ;;  %v2167_v53 = vpack.c.bf16 %v1008_v40, %v1007_v29  ;;  %v63_v3 = vld [vmem:[%s3347_s4 + $0xd8] sm:$0xff] }
 0x1fa   :  { %2166 = vmatprep.subr.bf16.mxu1 %v3395_v32  ;;  %v985_v60 = vsel %vm661_vm7, %v977_v43, %v3412_v62  ;;  %v2170_v54 = vpack.c.bf16 %v1010_v9, %v1009_v5  ;;  %v2277_v9 = vld [vmem:[%s3343_s0 + $0x8] sm:$0xff] }
 0x1fb   :  { %v993_v12 = vsel %vm670_vm8, %v985_v60, %v3414_v52 }
 0x1fc   :  { %2135 = vmatpush3.bf16.msra.mxu0 %v2134_v33  ;;  %v3405_v33 = vld [vmem:[#allocation22_spill] sm:$0xff] }
 0x1fd   :  { %2136 = vmatprep.subr.bf16.mxu0 %v3395_v32  ;;  %v978_v14 = vsel %vm652_vm6, %v970_v17, %v3405_v33  ;;  %v60_v33 = vld [vmem:[%s3347_s4 + $0xc0] sm:$0xff] }
 0x200   :  { %2138 = vmatpush3.bf16.msra.mxu0 %v2137_v56  ;;  %v984_v56 = vsel %vm661_vm7, %v976_v10, %v3406_v38 }
 0x201   :  { %2139 = vmatprep.subr.bf16.mxu0 %v3395_v32 }
 0x204   :  { %2141 = vmatpush3.bf16.msra.mxu0 %v2140_v27  ;;  %v3408_v27 = vld [vmem:[#allocation15_spill] sm:$0xff] }
 0x205   :  { %2154 = vmatprep.subr.bf16.mxu0 %v3395_v32 }
 0x2a5   :  { %v764_v19 = vpop.f32.mrb[8].mxu1 }
 0x2a6   :  { %v765_v31 = vadd.f32 %v764_v19, %v32_v58  ;;  %v1937_v61 = vpop.f32.mrb[9].mxu1  ;;  %v983_v58 = vsel %vm661_vm7, %v975_v57, %v3408_v27  ;;  %v3409_v19 = vld [vmem:[#allocation16_spill] sm:$0xff]  ;;  %v58_v57 = vld [vmem:[%s3347_s4 + $0xb0] sm:$0xff] }
 0x2a7   :  { %v3410_v61 = vld [vmem:[#allocation24_spill] sm:$0xff]  ;;  %v991_v4 = vsel %vm670_vm8, %v983_v58, %v3411_v2  ;;  %v2194_v28 = vpack.c.bf16 %v59_v26, %v58_v57  ;;  %v1243_v2 = vsub.s32 2, %v2607_v63 }
 0x2a8   :  { %1239 = vst.msk [vmem:[#allocation4] sm:$0xff] %vm224_vm0, %v765_v31  ;;  %v768_v30 = vsel %vm224_vm0, %v765_v31, -inf  ;;  %v999_v11 = vmul.f32 %v991_v4, %v2739_v48  ;;  %v76_v26 = vld [vmem:[%s3347_s4 + $0x140] sm:$0xff] }
 0x2a9   :  { %769 = vmax.xlane.f32.xlu0 %v768_v30  ;;  %v986_v30 = vsel %vm661_vm7, %v978_v14, %v3410_v61  ;;  %v61_v14 = vld [vmem:[%s3347_s4 + $0xc8] sm:$0xff]  ;;  %v1244_v4 = vrot.slane %v2617_v1, %v1243_v2 }
 0x2aa   :  { %v994_v7 = vsel %vm670_vm8, %v986_v30, %v3413_v42  ;;  %v2198_v38 = vpack.c.bf16 %v61_v14, %v60_v33  ;;  %v78_v14 = vld [vmem:[%s3347_s4 + $0x150] sm:$0xff] }
 0x2ab   :  { %v1002_v8 = vmul.f32 %v994_v7, %v2806_v44  ;;  %v1012_v44 = vmul.f32 %v3023_v20, %v2871_v46 }
 0x336   :  { %v770_v47 = vpop.xlane.xlu0 %769 }
 0x337   :  { %v771_v0 = vsub.f32 %v765_v31, %v770_v47  ;;  %v992_v31 = vsel %vm670_vm8, %v984_v56, %v3409_v19  ;;  %v62_v56 = vld [vmem:[%s3347_s4 + $0xd0] sm:$0xff] }
 0x338   :  { %v1000_v34 = vmul.f32 %v992_v31, %v2724_v41  ;;  %v1001_v41 = vmul.f32 %v993_v12, %v2815_v50  ;;  %v2202_v43 = vpack.c.bf16 %v63_v3, %v62_v56 }
 0x339   :  { %v772_v45 = vmul.f32 1.442695, %v771_v0  ;;  %v1011_v0 = vmul.f32 %v3023_v20, %v2880_v55  ;;  %v1014_v55 = vmul.f32 %v3023_v20, %v2920_v36 }
 0x33a   :  { %v2155_v47 = vpack.c.bf16 %v1000_v34, %v999_v11  ;;  %v2158_v48 = vpack.c.bf16 %v1002_v8, %v1001_v41  ;;  %v1368_v34 = vpop.permute.xlu1 %1367  ;;  %v2276_v8 = vld [vmem:[%s3343_s0] sm:$0xff] }
 0x33b   :  { %2244 = vpow2.f32 %v772_v45  ;;  %v2173_v50 = vpack.c.bf16 %v1012_v44, %v1011_v0  ;;  %v2176_v46 = vpack.c.bf16 %v1014_v55, %v1013_v15 }
 0x345   :  { %v2245_v59 = vpop.eup %2244 }
 0x346   :  { %1955 = vmatmul.mubr.msk.f32.vlgmr.msra.gmra.mrb[4].mxu0 %vm224_vm0, %v2245_v59  ;;  %1974 = vmatmul.mubr.msk.f32.vlgmr.msra.gmra.mrb[10].mxu1 %vm224_vm0, %v2245_v59 }
 0x347   :  { %2156 = vmatpush3.bf16.msra.mxu0 %v2155_v47  ;;  %2168 = vmatpush3.bf16.msra.mxu1 %v2167_v53 }
 0x348   :  { %2157 = vmatprep.subr.bf16.mxu0 %v3395_v32  ;;  %2169 = vmatprep.subr.bf16.mxu1 %v3395_v32 }
 0x349   :  { %1992 = vmatprep.mubr.msk.f32.mxu0 %vm2336_vm2, %v3396_v21  ;;  %2011 = vmatprep.mubr.msk.f32.mxu1 %vm2336_vm2, %v3396_v21 }
 0x34b   :  { %2159 = vmatpush3.bf16.msra.mxu0 %v2158_v48  ;;  %2171 = vmatpush3.bf16.msra.mxu1 %v2170_v54 }
 0x34c   :  { %2160 = vmatprep.subr.bf16.mxu0 %v3395_v32  ;;  %2172 = vmatprep.subr.bf16.mxu1 %v3395_v32 }
 0x34f   :  { %2162 = vmatpush3.bf16.msra.mxu0 %v2161_v39  ;;  %2174 = vmatpush3.bf16.msra.mxu1 %v2173_v50 }
 0x350   :  { %2163 = vmatprep.subr.bf16.mxu0 %v3395_v32  ;;  %2175 = vmatprep.subr.bf16.mxu1 %v3395_v32 }
 0x353   :  { %2165 = vmatpush3.bf16.msra.mxu0 %v2164_v23  ;;  %2177 = vmatpush3.bf16.msra.mxu1 %v2176_v46 }
 0x354   :  { %2178 = vmatprep.subr.bf16.mxu0 %v3395_v32 }
 0x356   :  { %1993 = vmatmul.mubr.msk.f32.vlgmr.msra.gmra.mrb[6].mxu0 %vm224_vm0, %v3415_v16 }
 0x357   :  { %2180 = vmatpush3.bf16.msra.mxu0 %v3017_v25  ;;  %2030 = vmatprep.mubr.msk.f32.mxu0 %vm2336_vm2, %v3396_v21  ;;  %v33_v21 = vld [vmem:[%s3346_s3 + $0x8] sm:$0xff] }
 0x358   :  { %2181 = vmatprep.subr.bf16.mxu0 %v3395_v32 }
 0x35b   :  { %2183 = vmatpush3.bf16.msra.mxu0 %v3044_v24  ;;  %v3416_v24 = vld [vmem:[#allocation8_spill] sm:$0xff] }
 0x35c   :  { %2184 = vmatprep.subr.bf16.mxu0 %v3395_v32 }
 0x35f   :  { %2186 = vmatpush3.bf16.msra.mxu0 %v3050_v51  ;;  %v56_v51 = vld [vmem:[%s3347_s4 + $0xa0] sm:$0xff] }
 0x360   :  { %2187 = vmatprep.subr.bf16.mxu0 %v3395_v32 }
 0x363   :  { %2189 = vmatpush3.bf16.msra.mxu0 %v3055_v6  ;;  %v57_v6 = vld [vmem:[%s3347_s4 + $0xa8] sm:$0xff] }
 0x364   :  { %v2190_v10 = vpack.c.bf16 %v57_v6, %v56_v51 }
 0x366   :  { %2191 = vmatprep.subr.bf16.mxu1 %v2190_v10 }
 0x419   :  { %v843_v36 = vpop.f32.mrb[4].mxu0  ;;  %v913_v13 = vpop.f32.mrb[10].mxu1 }
 0x41a   :  { %2246 = vrcp.f32 %v913_v13  ;;  %v1956_v37 = vpop.f32.mrb[5].mxu0  ;;  %v1975_v39 = vpop.f32.mrb[11].mxu1 }
 0x424   :  { %v2247_v18 = vpop.eup %2246 }
 0x425   :  { %v918_v49 = vmul.f32 %v2247_v18, %v843_v36 }
 0x429   :  { %v1084_v23 = vpop.f32.mrb[6].mxu0 }
 0x42a   :  { %v1085_v25 = vadd.f32 %v1084_v23, %v33_v21  ;;  %v1994_v20 = vpop.f32.mrb[7].mxu0 }
 0x42c   :  { %1240 = vst.msk [vmem:[#allocation4 + $0x8] sm:$0xff] %vm224_vm0, %v1085_v25  ;;  %v1088_v32 = vsel %vm224_vm0, %v1085_v25, -inf }
 0x42d   :  { %1089 = vmax.xlane.f32.xlu0 %v1088_v32 }
 0x443   :  { %1369 = vrot.lane.b32.xlu0 %v3416_v24, %s2331_s21 }
 0x4ba   :  { %v1090_v35 = vpop.xlane.xlu0 %1089 }
 0x4bb   :  { %v1091_v17 = vsub.f32 %v1085_v25, %v1090_v35  ;;  %v73_v35 = vld [vmem:[%s3347_s4 + $0x128] sm:$0xff] }
 0x4bd   :  { %v1092_v45 = vmul.f32 1.442695, %v1091_v17 }
 0x4be   :  { %v1370_v7 = vpop.permute.xlu0 %1369 }
 0x4bf   :  { %2248 = vpow2.f32 %v1092_v45  ;;  %v74_v45 = vld [vmem:[%s3347_s4 + $0x130] sm:$0xff] }
 0x4c9   :  { %v2249_v22 = vpop.eup %2248 }
 0x4ca   :  { %2012 = vmatmul.mubr.msk.f32.vlgmr.msra.gmra.mrb[12].mxu1 %vm224_vm0, %v2249_v22  ;;  %2031 = vmatmul.mubr.msk.f32.vlgmr.msra.gmra.mrb[8].mxu0 %vm224_vm0, %v2249_v22  ;;  %v75_v22 = vld [vmem:[%s3347_s4 + $0x138] sm:$0xff] }
 0x4cb   :  { %2049 = vmatprep.mubr.msk.f32.mxu1 %vm224_vm0, %v918_v49  ;;  %2193 = vmatpush3.bf16.msra.mxu1 %v2190_v10  ;;  %v72_v10 = vld [vmem:[%s3347_s4 + $0x120] sm:$0xff]  ;;  %v2210_v57 = vpack.c.bf16 %v75_v22, %v74_v45  ;;  %v81_v45 = vld [vmem:[%s3347_s4 + $0x168] sm:$0xff] }
 0x4cc   :  { %2195 = vmatprep.subr.bf16.mxu1 %v2194_v28  ;;  %v2206_v17 = vpack.c.bf16 %v73_v35, %v72_v10 }
 0x4ce   :  { %2207 = vmatprep.subr.bf16.mxu0 %v2206_v17 }
 0x4cf   :  { %2197 = vmatpush3.bf16.msra.mxu1 %v2194_v28  ;;  %2209 = vmatpush3.bf16.msra.mxu0 %v2206_v17  ;;  %v77_v28 = vld [vmem:[%s3347_s4 + $0x148] sm:$0xff]  ;;  %v80_v17 = vld [vmem:[%s3347_s4 + $0x160] sm:$0xff] }
 0x4d0   :  { %2199 = vmatprep.subr.bf16.mxu1 %v2198_v38  ;;  %2211 = vmatprep.subr.bf16.mxu0 %v2210_v57  ;;  %v2214_v33 = vpack.c.bf16 %v77_v28, %v76_v26  ;;  %v2222_v22 = vpack.c.bf16 %v81_v45, %v80_v17 }
 0x4d3   :  { %2201 = vmatpush3.bf16.msra.mxu1 %v2198_v38  ;;  %2213 = vmatpush3.bf16.msra.mxu0 %v2210_v57  ;;  %v79_v38 = vld [vmem:[%s3347_s4 + $0x158] sm:$0xff] }
 0x4d4   :  { %2203 = vmatprep.subr.bf16.mxu1 %v2202_v43  ;;  %2215 = vmatprep.subr.bf16.mxu0 %v2214_v33  ;;  %v2218_v56 = vpack.c.bf16 %v79_v38, %v78_v14 }
 0x4d7   :  { %2205 = vmatpush3.bf16.msra.mxu1 %v2202_v43  ;;  %2217 = vmatpush3.bf16.msra.mxu0 %v2214_v33 }
 0x4d8   :  { %2219 = vmatprep.subr.bf16.mxu0 %v2218_v56  ;;  %2223 = vmatprep.subr.bf16.mxu1 %v2222_v22 }
 0x4db   :  { %2221 = vmatpush3.bf16.msra.mxu0 %v2218_v56  ;;  %v1537_v56 = vsub.s32 6, %v2607_v63 }
 0x59d   :  { %v1163_v27 = vpop.f32.mrb[12].mxu1  ;;  %v1233_v58 = vpop.f32.mrb[8].mxu0 }
 0x59e   :  { %2250 = vrcp.f32 %v1233_v58  ;;  %v2013_v19 = vpop.f32.mrb[13].mxu1  ;;  %v2032_v31 = vpop.f32.mrb[9].mxu0 }
 0x5a8   :  { %v2251_v61 = vpop.eup %2250 }
 0x5a9   :  { %v1238_v30 = vmul.f32 %v2251_v61, %v1163_v27 }
 0x5ab   :  { %2050 = vmatmul.mubr.msk.f32.vlgmr.msra.gmra.mrb[14].mxu1 %vm224_vm0, %v1238_v30 }
 0x5ac   :  { %2225 = vmatpush3.bf16.msra.mxu1 %v2222_v22 }
 0x67e   :  { %v2051_v62 = vpop.f32.mrb[14].mxu1 }
 0x67f   :  { %v1317_v60 = vpop.f32.mrb[15].mxu1  ;;  %v1323_v40 = vadd.f32 %v2051_v62, %v1244_v4 }
 0x680   :  { %v1318_v29 = vadd.f32 %v1317_v60, %v1244_v4 }
 0x681   :  { %v1374_v11 = vadd.f32 %v1370_v7, %v1323_v40  ;;  %v1327_v41 = vadd.f32 %v2277_v9, %v1323_v40  ;;  %v1363_v7 = vsub.s32 4, %v2607_v63 }
 0x682   :  { %v1373_v42 = vadd.f32 %v1368_v34, %v1318_v29  ;;  %v1326_v59 = vadd.f32 %v2276_v8, %v1318_v29  ;;  %v1357_v34 = vsub.s32 3, %v2607_v63 }
 0x683   :  { %v1331_v48 = vsel %vm86_vm1, %v1327_v41, 0.0 }
 0x684   :  { %1377 = vrot.lane.b32.xlu1 %v1373_v42, %s2339_s13  ;;  %v1328_v5 = vsel %vm86_vm1, %v1326_v59, 0.0 }
 0x688   :  { %1379 = vrot.lane.b32.xlu1 %v1374_v11, %s2339_s13 }
 0x6f6   :  { %v1378_v52 = vpop.permute.xlu1 %1377 }
 0x6f7   :  { %v1383_v12 = vsel %vm86_vm1, %v1378_v52, 0.0 }
 0x6f8   :  { %1384 = vadd.xlane.f32.xlu1 %v1383_v12  ;;  %v2278_v12 = vld [vmem:[%s3348_s5] sm:$0xff] }
 0x6f9   :  { %v1364_v8 = vrot.slane %v2278_v12, %v1363_v7 }
 0x6fa   :  { %v1380_v47 = vpop.permute.xlu1 %1379 }
 0x6fb   :  { %v1386_v53 = vsel %vm86_vm1, %v1380_v47, 0.0 }
 0x6fc   :  { %1387 = vadd.xlane.f32.xlu0 %v1386_v53  ;;  %1329 = vadd.xlane.f32.xlu1 %v1328_v5 }
 0x700   :  { %1332 = vadd.xlane.f32.xlu1 %v1331_v48 }
 0x785   :  { %v1385_v54 = vpop.xlane.xlu1 %1384 }
 0x786   :  { %v1389_v0 = vmul.f32 0.03125, %v1385_v54 }
 0x788   :  { %v3219_v44 = vsub.f32 %v1373_v42, %v1389_v0  ;;  %v1358_v42 = vrot.slane %v2617_v1, %v1357_v34 }
 0x789   :  { %v1388_v50 = vpop.xlane.xlu0 %1387  ;;  %v1330_v36 = vpop.xlane.xlu1 %1329 }
 0x78a   :  { %v1390_v15 = vmul.f32 0.03125, %v1388_v50  ;;  %v1393_v55 = vmul.f32 %v3219_v44, %v3219_v44  ;;  %v1335_v13 = vmul.f32 0.03125, %v1330_v36 }
 0x78c   :  { %v3223_v46 = vsub.f32 %v1374_v11, %v1390_v15  ;;  %1397 = vrot.lane.b32.xlu0 %v1393_v55, %s2339_s13  ;;  %v1337_v37 = vsub.f32 %v1326_v59, %v1335_v13 }
 0x78d   :  { %v1333_v49 = vpop.xlane.xlu1 %1332 }
 0x78e   :  { %v1394_v16 = vmul.f32 %v3223_v46, %v3223_v46  ;;  %v1339_v39 = vmul.f32 %v1337_v37, %v1337_v37  ;;  %v1336_v21 = vmul.f32 0.03125, %v1333_v49 }
 0x790   :  { %1399 = vrot.lane.b32.xlu1 %v1394_v16, %s2339_s13  ;;  %v1341_v18 = vsel %vm86_vm1, %v1339_v39, 0.0  ;;  %v1338_v23 = vsub.f32 %v1327_v41, %v1336_v21 }
 0x792   :  { %v1340_v32 = vmul.f32 %v1338_v23, %v1338_v23 }
 0x794   :  { %v1344_v51 = vsel %vm86_vm1, %v1340_v32, 0.0 }
 0x7b4   :  { %1342 = vadd.xlane.f32.xlu1 %v1341_v18 }
 0x7fe   :  { %v1398_v25 = vpop.permute.xlu0 %1397 }
 0x7ff   :  { %v1403_v20 = vsel %vm86_vm1, %v1398_v25, 0.0 }
 0x800   :  { %1404 = vadd.xlane.f32.xlu0 %v1403_v20 }
 0x802   :  { %v1400_v24 = vpop.permute.xlu1 %1399 }
 0x803   :  { %v1406_v6 = vsel %vm86_vm1, %v1400_v24, 0.0 }
 0x804   :  { %1345 = vadd.xlane.f32.xlu0 %v1344_v51  ;;  %1407 = vadd.xlane.f32.xlu1 %v1406_v6 }
 0x841   :  { %v1343_v3 = vpop.xlane.xlu1 %1342 }
 0x842   :  { %v1347_v43 = vmul.f32 0.03125, %v1343_v3  ;;  %v1543_v3 = vsub.s32 7, %v2607_v63 }
 0x844   :  { %v1349_v27 = vadd.f32 1e-12, %v1347_v43  ;;  %v1538_v43 = vrot.slane %v2278_v12, %v1537_v56 }
 0x846   :  { %2252 = vrsqrt.f32 %v1349_v27 }
 0x850   :  { %v2253_v29 = vpop.eup %2252 }
 0x851   :  { %v1353_v40 = vmul.f32 %v2253_v29, %v1337_v37 }
 0x853   :  { %v1359_v52 = vmul.f32 %v1358_v42, %v1353_v40 }
 0x855   :  { %v3264_v41 = vadd.f32 %v1364_v8, %v1359_v52 }
 0x88d   :  { %v1405_v58 = vpop.xlane.xlu0 %1404 }
 0x88e   :  { %v1409_v19 = vmul.f32 0.03125, %v1405_v58 }
 0x890   :  { %v1411_v31 = vadd.f32 1e-12, %v1409_v19 }
 0x891   :  { %v1346_v61 = vpop.xlane.xlu0 %1345  ;;  %v1408_v30 = vpop.xlane.xlu1 %1407 }
 0x892   :  { %2254 = vrsqrt.f32 %v1411_v31  ;;  %v1348_v2 = vmul.f32 0.03125, %v1346_v61  ;;  %v1410_v4 = vmul.f32 0.03125, %v1408_v30  ;;  %v1544_v31 = vrot.slane %v2278_v12, %v1543_v3 }
 0x894   :  { %v1350_v62 = vadd.f32 1e-12, %v1348_v2  ;;  %v1412_v60 = vadd.f32 1e-12, %v1410_v4 }
 0x896   :  { %2256 = vrsqrt.f32 %v1350_v62 }
 0x897   :  { %2258 = vrsqrt.f32 %v1412_v60 }
 0x89c   :  { %v2255_v11 = vpop.eup %2254 }
 0x89d   :  { %v1415_v59 = vmul.f32 %v2255_v11, %v3219_v44 }
 0x89f   :  { %v1417_v47 = vmul.f32 %v1415_v59, %v1358_v42 }
 0x8a0   :  { %v2257_v53 = vpop.eup %2256 }
 0x8a1   :  { %v2259_v5 = vpop.eup %2258  ;;  %v1354_v9 = vmul.f32 %v2257_v53, %v1338_v23  ;;  %v3266_v48 = vadd.f32 %v1417_v47, %v1364_v8 }
 0x8a2   :  { %v1416_v1 = vmul.f32 %v2259_v5, %v3223_v46  ;;  %v1425_v46 = vsub.s32 5, %v2607_v63  ;;  %v1748_v63 = vld [vmem:[%s3348_s5 + $0x8] ss:$0 sm:$0xff]  ;;  %s2340_s5 = smov [#allocation4]  }
 0x8a3   :  { %v1421_v54 = vsel %vm86_vm1, %v3264_v41, %v3266_v48  ;;  %v1360_v0 = vmul.f32 %v1358_v42, %v1354_v9 }
 0x8a4   :  { %2068 = vmatprep.mubr.msk.f32.mxu0 %vm224_vm0, %v1421_v54  ;;  %v1418_v50 = vmul.f32 %v1416_v1, %v1358_v42  ;;  %v1426_v16 = vrot.slane %v2278_v12, %v1425_v46 }
 0x8a5   :  { %v3273_v15 = vadd.f32 %v1364_v8, %v1360_v0 }
 0x8a6   :  { %v3275_v44 = vadd.f32 %v1418_v50, %v1364_v8 }
 0x8a8   :  { %v1422_v55 = vsel %vm86_vm1, %v3273_v15, %v3275_v44 }
 0x8a9   :  { %2069 = vmatmul.mubr.msk.f32.vlgmr.msra.gmra.mrb[10].mxu0 %vm224_vm0, %v1422_v55 }
 0x97c   :  { %v2070_v36 = vpop.f32.mrb[10].mxu0 }
 0x97d   :  { %v1505_v13 = vadd.f32 %v2070_v36, %v1426_v16  ;;  %v1499_v37 = vpop.f32.mrb[11].mxu0 }
 0x97e   :  { %v1500_v39 = vadd.f32 %v1499_v37, %v1426_v16 }
 0x97f   :  { %v1511_v18 = vsel %vm626_vm4, %v1505_v13, 0.0 }
 0x980   :  { %1512 = vadd.xlane.f32.xlu1 %v1511_v18  ;;  %v1508_v49 = vsel %vm626_vm4, %v1500_v39, 0.0 }
 0x981   :  { %1509 = vadd.xlane.f32.xlu0 %v1508_v49 }
 0xa0d   :  { %v1513_v21 = vpop.xlane.xlu1 %1512 }
 0xa0e   :  { %v1516_v23 = vmul.f32 0.0625, %v1513_v21  ;;  %v1510_v25 = vpop.xlane.xlu0 %1509 }
 0xa0f   :  { %v1515_v20 = vmul.f32 0.0625, %v1510_v25 }
 0xa10   :  { %v1518_v32 = vsub.f32 %v1505_v13, %v1516_v23 }
 0xa11   :  { %v1517_v24 = vsub.f32 %v1500_v39, %v1515_v20 }
 0xa12   :  { %v1520_v51 = vmul.f32 %v1518_v32, %v1518_v32 }
 0xa13   :  { %v1519_v6 = vmul.f32 %v1517_v24, %v1517_v24 }
 0xa14   :  { %v1524_v10 = vsel %vm626_vm4, %v1520_v51, 0.0 }
 0xa15   :  { %1525 = vadd.xlane.f32.xlu1 %v1524_v10  ;;  %v1521_v35 = vsel %vm626_vm4, %v1519_v6, 0.0 }
 0xa16   :  { %1522 = vadd.xlane.f32.xlu0 %v1521_v35 }
 0xaa2   :  { %v1526_v57 = vpop.xlane.xlu1 %1525 }
 0xaa3   :  { %v1528_v26 = vmul.f32 0.0625, %v1526_v57  ;;  %v1523_v28 = vpop.xlane.xlu0 %1522 }
 0xaa4   :  { %v1527_v33 = vmul.f32 0.0625, %v1523_v28 }
 0xaa5   :  { %v1530_v14 = vadd.f32 1e-05, %v1528_v26 }
 0xaa6   :  { %v1529_v38 = vadd.f32 1e-05, %v1527_v33 }
 0xaa7   :  { %2260 = vrsqrt.f32 %v1530_v14 }
 0xaa8   :  { %2262 = vrsqrt.f32 %v1529_v38 }
 0xab1   :  { %v2261_v27 = vpop.eup %2260 }
 0xab2   :  { %v2263_v58 = vpop.eup %2262  ;;  %v1534_v19 = vmul.f32 %v2261_v27, %v1518_v32 }
 0xab3   :  { %v1533_v61 = vmul.f32 %v2263_v58, %v1517_v24 }
 0xab4   :  { %v1540_v30 = vmul.f32 %v1538_v43, %v1534_v19 }
 0xab5   :  { %v1539_v2 = vmul.f32 %v1538_v43, %v1533_v61 }
 0xab6   :  { %v1546_v4 = vadd.f32 %v1544_v31, %v1540_v30 }
 0xab7   :  { %v1545_v62 = vadd.f32 %v1544_v31, %v1539_v2 }
 0xab8   :  { %v1548_v34 = vmax.f32 %v1546_v4, 0.0 }
 0xab9   :  { %v1547_v60 = vmax.f32 %v1545_v62, 0.0 }
 0xabb   :  { %2075 = vmatprep.mubr.msk.f32.mxu1 %vm626_vm4, %v1547_v60 }
 0xabc   :  { %2076 = vmatmul.mubr.msk.f32.vlgmr.msra.gmra.mrb[16].mxu1 %vm626_vm4, %v1548_v34 }
 0xb8f   :  { %v2077_v29 = vpop.f32.mrb[16].mxu1 }
 0xb90   :  { %v1631_v40 = vadd.f32 %v2077_v29, %v1748_v63  ;;  %v1625_v42 = vpop.f32.mrb[17].mxu1 }
 0xb91   :  { %v1626_v7 = vadd.f32 %v1748_v63, %v1625_v42 }
 0xb92   :  { %1638 = vrot.lane.b32.xlu1 %v1631_v40, %s2339_s13 }
 0xb93   :  { %1636 = vrot.lane.b32.xlu0 %v1626_v7, %s2339_s13 }
 0xc04   :  { %v1639_v12 = vpop.permute.xlu1 %1638 }
 0xc05   :  { %v1637_v11 = vpop.permute.xlu0 %1636  ;;  %v1643_v8 = vmax.f32 %v1631_v40, %v1639_v12 }
 0xc06   :  { %v1642_v52 = vmax.f32 %v1626_v7, %v1637_v11 }
 0xc08   :  { %1652 = vrot.lane.b32.xlu1 %v1642_v52, %s2331_s21 }
 0xc0c   :  { %1654 = vrot.lane.b32.xlu1 %v1643_v8, %s2331_s21  ;;  %s1711_s21 = sshll.u32 %s2340_s5, 4  ;;  %s1712_s21 = int_to_ptr.vmem [resolvable:$true] %s1711_s21 }
 0xc0d   :  { %s2279_s17 = scalar_lea.vmem %s1712_s21, 256  ;;  %p2284_p1 = scmp.lt.s32.totalorder %s1712_s21, %s1712_s21 }
 0xc0e   :  { %p2280_p0 = scmp.ne.s32.totalorder %s1712_s21, %s2279_s17  ;;  %p2285_p2 = scmp.lt.s32.totalorder %s2279_s17, %s2279_s17 }
 0xc10   :  { %p2286_p3 = por %p2285_p2, %p2284_p1 }
 0xc12   :  { %p2287_p4 = pnand %p2286_p3, %p2280_p0 }
 0xc7a   :  { %v1653_v59 = vpop.permute.xlu1 %1652 }
 0xc7b   :  { %v1658_v47 = vsub.f32 %v1626_v7, %v1653_v59 }
 0xc7d   :  { %v1660_v53 = vmul.f32 1.442695, %v1658_v47 }
 0xc7e   :  { %v1655_v5 = vpop.permute.xlu1 %1654 }
 0xc7f   :  { %2264 = vpow2.f32 %v1660_v53  ;;  %v1659_v9 = vsub.f32 %v1631_v40, %v1655_v5 }
 0xc81   :  { %v1662_v1 = vmul.f32 1.442695, %v1659_v9 }
 0xc83   :  { %2266 = vpow2.f32 %v1662_v1 }
 0xc89   :  { %v2265_v54 = vpop.eup %2264 }
 0xc8a   :  { %1680 = vrot.lane.b32.xlu0 %v2265_v54, %s2339_s13  ;;  %v1666_v0 = vmul.f32 %v2265_v54, %v3266_v48 }
 0xc8d   :  { %v2267_v50 = vpop.eup %2266 }
 0xc8e   :  { %1670 = vrot.lane.b32.xlu0 %v1666_v0, %s2339_s13  ;;  %1682 = vrot.lane.b32.xlu1 %v2267_v50, %s2339_s13  ;;  %v1667_v55 = vmul.f32 %v2267_v50, %v3275_v44 }
 0xc92   :  { %1672 = vrot.lane.b32.xlu1 %v1667_v55, %s2339_s13 }
 0xc93   :  { %2290 = shalt.err (!%p2287_p4)
}
 0xc94   :  { %s2291_s20 = scalar_lea.hbm %s3351_s8, 256 }
 0xc95   :  { %p2292_p5 = scmp.ne.s32.totalorder %s3351_s8, %s2291_s20  ;;  %p2295_p6 = scmp.lt.u32.totalorder %s2291_s20, %s3351_s8 }
 0xc97   :  { %p2297_p7 = pnand %p2295_p6, %p2292_p5 }
 0xc99   :  { %2300 = shalt.err (!%p2297_p7)
}
 0xc9a   :  { %s2341_s13 = smov 128   ;;  %v1644_v48 = vsub.f32 %v1626_v7, %v1642_v52  ;;  %v1645_v44 = vsub.f32 %v1631_v40, %v1643_v8 }
 0xc9b   :  { %1717 = dma.vmem_to_hbm [thread:$0]  %s1712_s21, 256, %s3351_s8, [#allocation5], %s2341_s13, %s2341_s13, %s2328_s18  }
 0xc9c   :  { %v1646_v46 = vmul.f32 1.442695, %v1644_v48  ;;  %v1648_v16 = vmul.f32 1.442695, %v1645_v44  ;;  %s2342_s8 = smov [#allocation2]  }
 0xc9d   :  { %s1699_s27 = sshll.u32 %s2342_s8, 4  ;;  %s1700_s27 = int_to_ptr.vmem [resolvable:$true] %s1699_s27 }
 0xc9e   :  { %2268 = vpow2.f32 %v1646_v46  ;;  %s2301_s26 = scalar_lea.vmem %s1700_s27, 256  ;;  %p2306_p9 = scmp.lt.s32.totalorder %s1700_s27, %s1700_s27 }
 0xc9f   :  { %2270 = vpow2.f32 %v1648_v16  ;;  %p2302_p8 = scmp.ne.s32.totalorder %s1700_s27, %s2301_s26  ;;  %p2307_p10 = scmp.lt.s32.totalorder %s2301_s26, %s2301_s26 }
 0xca1   :  { %p2308_p11 = por %p2307_p10, %p2306_p9 }
 0xca3   :  { %p2309_p12 = pnand %p2308_p11, %p2302_p8 }
 0xca8   :  { %v2269_v36 = vpop.eup %2268 }
 0xca9   :  { %v2271_v39 = vpop.eup %2270  ;;  %v1664_v23 = vmul.f32 %v2269_v36, %v3264_v41 }
 0xcaa   :  { %v1665_v51 = vmul.f32 %v2271_v39, %v3273_v15 }
 0xcfc   :  { %v1681_v13 = vpop.permute.xlu0 %1680 }
 0xcfd   :  { %v1686_v37 = vadd.f32 %v2269_v36, %v1681_v13 }
 0xcff   :  { %2272 = vrcp.f32 %v1686_v37 }
 0xd00   :  { %v1683_v18 = vpop.permute.xlu1 %1682  ;;  %v1671_v21 = vpop.permute.xlu0 %1670 }
 0xd01   :  { %v1687_v49 = vadd.f32 %v2271_v39, %v1683_v18  ;;  %v1676_v25 = vadd.f32 %v1671_v21, %v1664_v23 }
 0xd03   :  { %2274 = vrcp.f32 %v1687_v49 }
 0xd04   :  { %v1673_v32 = vpop.permute.xlu1 %1672 }
 0xd05   :  { %v1677_v6 = vadd.f32 %v1673_v32, %v1665_v51 }
 0xd09   :  { %v2273_v20 = vpop.eup %2272 }
 0xd0a   :  { %v1689_v24 = vmul.f32 %v2273_v20, %v1676_v25 }
 0xd0c   :  { %1692 = vst.msk [vmem:[#allocation2] sm:$0xff] %vm86_vm1, %v1689_v24 }
 0xd0d   :  { %v2275_v10 = vpop.eup %2274 }
 0xd0e   :  { %v1691_v35 = vmul.f32 %v2275_v10, %v1677_v6 }
 0xd10   :  { %1693 = vst.msk [vmem:[#allocation2 + $0x8] sm:$0xff] %vm86_vm1, %v1691_v35 }
 0xd11   :  { %2312 = shalt.err (!%p2309_p12)
}
 0xd12   :  { %s2313_s29 = scalar_lea.hbm %s3350_s7, 256 }
 0xd13   :  { %p2314_p13 = scmp.ne.s32.totalorder %s3350_s7, %s2313_s29  ;;  %p2317_p0 = scmp.lt.u32.totalorder %s2313_s29, %s3350_s7 }
 0xd15   :  { %p2319_p1 = pnand %p2317_p0, %p2314_p13 }
 0xd17   :  { %2322 = shalt.err (!%p2319_p1)
}
 0xd18   :  { %1705 = dma.vmem_to_hbm [thread:$0]  %s1700_s27, 256, %s3350_s7, [#allocation3], %s2341_s13, %s2341_s13, %s2328_s18  }
 0xd19   :  { %2323 = dma.done.wait [#allocation3], 256  }
 0xd1a   :  { %2324 = vsyncadd [#allocation3], 4294967040 }
 0xd1b   :  { %2325 = dma.done.wait [#allocation5], 256  }
 0xd1c   :  { %2326 = vsyncadd [#allocation5], 4294967040 }
 0xd1d   :  { %1724 = vsyncpa [#allocation3], 1 }
 0xd1e   :  { %1725 = vsyncpa [#allocation5], 1 }

</bundles_post_ra>
